<compile_context>
chip_gen: v7x
topology: tpu7x:2x2x1
jax: 0.10.0
libtpu: 0.0.40
codegen_flags: <defaults>
</compile_context>

<pallas_src>
import functools

import jax
import jax.numpy as jnp
from jax import lax
from jax.experimental import pallas as pl
from jax.experimental.pallas import tpu as pltpu

LANE = 128
_NEG_BIG = -1e30

# VMEM budgeting (bytes). The fused single-shot path is taken only when the
# whole (padded) graph comfortably fits; otherwise the tiled path is used.
_FUSED_VMEM_BUDGET = 40 * 1024 * 1024
_FUSED_VMEM_LIMIT = 60 * 1024 * 1024      # below v7x's 64 MiB physical VMEM
_TILED_VMEM_LIMIT = 48 * 1024 * 1024


def _round_up(x, m):
    return ((x + m - 1) // m) * m


def _fused_vmem_estimate(np_pad, dp_pad):
    nn = np_pad * np_pad
    nd = np_pad * dp_pad
    # adj int8 (double-buffered) + mask_bias + ~2 live (Np,Np) f32 temps +
    # bf16 alpha + feats/out double buffers + f32/bf16 copies of h.
    return nn * (2 * 1 + 4 + 4 + 4 + 2) + nd * (4 * 2 * 2 + 4 + 2)


# ---------------------------------------------------------------------------
# Kernels
# ---------------------------------------------------------------------------
def _fused_global_attn_kernel(feats_ref, adj_ref, wa_ref, bias_ref, out_ref,
                              *, num_layers):
    """Fused chain of GlobalAttentionLayers for one (padded) graph per grid step.

    feats_ref : (1, Np, Dp) VMEM f32   node state (g.ndata['h'])
    adj_ref   : (1, Np, Np) VMEM int8  adj[d, s] != 0 iff edge s -> d
    wa_ref    : (2L, Dp)    VMEM f32   row 2l = W_l@a_src, row 2l+1 = W_l@a_dst
    bias_ref  : (L,)        SMEM f32   folded scalar bias per layer
    out_ref   : (1, Np, Dp) VMEM f32   final node state
    """
    h = feats_ref[0]                                  # (Np, Dp) f32
    wa = wa_ref[...]                                  # (2L, Dp) f32

    # Mask handling hoisted out of the layer loop (adjacency is static).
    adj_f = adj_ref[0].astype(jnp.float32)            # int8 -> f32 (Np, Np)
    mask_bias = jnp.where(adj_f > 0.0, jnp.float32(0.0), jnp.float32(_NEG_BIG))
    # Destinations with no incoming edge (isolated / padded rows) get alpha==0,
    # matching edge_softmax + sum-reduce semantics.
    has_edge = (jnp.max(mask_bias, axis=-1, keepdims=True)
                > jnp.float32(0.5 * _NEG_BIG)).astype(jnp.float32)   # (Np, 1)

    for l in range(num_layers):                       # static unroll (3 layers)
        wa_src = wa[2 * l:2 * l + 1, :]               # (1, Dp)
        wa_dst = wa[2 * l + 1:2 * l + 2, :]           # (1, Dp)
        c = bias_ref[l]                               # scalar from SMEM

        # score(d, s) = h[s].wa_src + h[d].wa_dst + c      (W / bias folded)
        e_src = lax.dot_general(wa_src, h, (((1,), (1,)), ((), ())),
                                preferred_element_type=jnp.float32)  # (1, Np)
        e_dst = lax.dot_general(h, wa_dst, (((1,), (1,)), ((), ())),
                                preferred_element_type=jnp.float32)  # (Np, 1)
        scores = e_dst + e_src + c
        scores = jnp.maximum(scores, 0.2 * scores)    # leaky_relu(0.2)
        scores = scores + mask_bias                   # additive edge mask

        m = jnp.max(scores, axis=-1, keepdims=True)
        p = jnp.exp(scores - m)                       # masked entries underflow to 0
        denom = jnp.sum(p, axis=-1, keepdims=True)
        inv = pl.reciprocal(denom, approx=True) * has_edge
        alpha = (p * inv).astype(jnp.bfloat16)

        # h_dst <- sum_s alpha(d, s) * h_src   (bf16 operands, f32 accumulation)
        h = jnp.dot(alpha, h.astype(jnp.bfloat16),
                    preferred_element_type=jnp.float32)

    out_ref[0] = h.astype(out_ref.dtype)


def _tiled_global_attn_layer_kernel(adj_ref, h_ref, wa_ref, bias_ref, out_ref,
                                    *, tile_m):
    """One GlobalAttentionLayer, tiled over destination-row blocks.

    adj_ref  : (TM, Np) VMEM int8 (streamed per tile)
    h_ref    : (Np, Dp) VMEM f32  (resident across the grid)
    wa_ref   : (2, Dp)  VMEM f32  [wa_src; wa_dst]
    bias_ref : (1,)     SMEM f32
    out_ref  : (TM, Dp) VMEM f32
    """
    i = pl.program_id(0)
    h = h_ref[...]                                    # (Np, Dp) f32
    adj_f = adj_ref[...].astype(jnp.float32)          # (TM, Np)
    mask_bias = jnp.where(adj_f > 0.0, jnp.float32(0.0), jnp.float32(_NEG_BIG))
    has_edge = (jnp.max(mask_bias, axis=-1, keepdims=True)
                > jnp.float32(0.5 * _NEG_BIG)).astype(jnp.float32)   # (TM, 1)

    wa_src = wa_ref[0:1, :]                           # (1, Dp)
    wa_dst = wa_ref[1:2, :]                           # (1, Dp)
    c = bias_ref[0]

    e_src = lax.dot_general(wa_src, h, (((1,), (1,)), ((), ())),
                            preferred_element_type=jnp.float32)      # (1, Np)
    row0 = pl.multiple_of(i * tile_m, tile_m)
    h_dst = h_ref[pl.ds(row0, tile_m), :]             # (TM, Dp)
    e_dst = lax.dot_general(h_dst, wa_dst, (((1,), (1,)), ((), ())),
                            preferred_element_type=jnp.float32)      # (TM, 1)

    scores = e_dst + e_src + c
    scores = jnp.maximum(scores, 0.2 * scores) + mask_bias
    m = jnp.max(scores, axis=-1, keepdims=True)
    p = jnp.exp(scores - m)
    denom = jnp.sum(p, axis=-1, keepdims=True)
    inv = pl.reciprocal(denom, approx=True) * has_edge
    alpha = (p * inv).astype(jnp.bfloat16)

    out_ref[...] = jnp.dot(alpha, h.astype(jnp.bfloat16),
                           preferred_element_type=jnp.float32).astype(out_ref.dtype)


# ---------------------------------------------------------------------------
# Wrappers
# ---------------------------------------------------------------------------
def _fold_layer_params(layer_params, d, dp_pad):
    wa_rows, biases = [], []
    for prm in layer_params:
        w, bw, aw, ab = prm["w"], prm["bw"], prm["aw"], prm["ab"]
        wa_rows.append(w @ aw[0])                     # (Fin,)  src vector
        wa_rows.append(w @ aw[1])                     # (Fin,)  dst vector
        biases.append(jnp.dot(bw[0], aw[0]) + jnp.dot(bw[0], aw[1]) + ab[0, 0])
    num_layers = len(layer_params)
    wa = jnp.zeros((2 * num_layers, dp_pad), jnp.float32)
    wa = wa.at[:, :d].set(jnp.stack(wa_rows, axis=0).astype(jnp.float32))
    bias = jnp.stack(biases).astype(jnp.float32)      # (L,)
    return wa, bias


def _run_fused(feats_p, adj_p, wa, bias, num_layers):
    b, np_pad, dp_pad = feats_p.shape
    return pl.pallas_call(
        functools.partial(_fused_global_attn_kernel, num_layers=num_layers),
        out_shape=jax.ShapeDtypeStruct((b, np_pad, dp_pad), jnp.float32),
        grid=(b,),
        in_specs=[
            pl.BlockSpec((1, np_pad, dp_pad), lambda g: (g, 0, 0)),    # feats
            pl.BlockSpec((1, np_pad, np_pad), lambda g: (g, 0, 0)),    # adj int8
            pl.BlockSpec((2 * num_layers, dp_pad), lambda g: (0, 0)),  # folded wa
            pl.BlockSpec(memory_space=pltpu.MemorySpace.SMEM),         # scalar biases
        ],
        out_specs=pl.BlockSpec((1, np_pad, dp_pad), lambda g: (g, 0, 0)),
        compiler_params=pltpu.CompilerParams(
            dimension_semantics=("parallel",),        # graphs shard across TCs (v7x)
            vmem_limit_bytes=_FUSED_VMEM_LIMIT),
    )(feats_p, adj_p, wa, bias)


def _run_tiled(feats_p, adj_p, wa, bias, num_layers, tile_m=128):
    np_pad, dp_pad = feats_p.shape
    grid = (np_pad // tile_m,)
    h = feats_p
    for l in range(num_layers):
        wa_l = wa[2 * l:2 * l + 2, :]                 # (2, Dp)
        bias_l = bias[l:l + 1]                        # (1,)
        h = pl.pallas_call(
            functools.partial(_tiled_global_attn_layer_kernel, tile_m=tile_m),
            out_shape=jax.ShapeDtypeStruct((np_pad, dp_pad), jnp.float32),
            grid=grid,
            in_specs=[
                pl.BlockSpec((tile_m, np_pad), lambda i: (i, 0)),      # adj row tile
                pl.BlockSpec((np_pad, dp_pad), lambda i: (0, 0)),      # h resident
                pl.BlockSpec((2, dp_pad), lambda i: (0, 0)),           # wa pair
                pl.BlockSpec(memory_space=pltpu.MemorySpace.SMEM),     # scalar bias
            ],
            out_specs=pl.BlockSpec((tile_m, dp_pad), lambda i: (i, 0)),
            compiler_params=pltpu.CompilerParams(
                dimension_semantics=("parallel",),    # dst tiles shard across TCs
                vmem_limit_bytes=_TILED_VMEM_LIMIT),
        )(adj_p, h, wa_l, bias_l)
    return h


def fused_global_attention_chain(node_feats, adj, layer_params, *,
                                 force_tiled=False):
    """Runs the GlobalAttentionLayer chain in Pallas.

    node_feats: (N, D) or (B, N, D);  adj: (N, N) or (B, N, N).
    """
    squeeze = node_feats.ndim == 2
    if squeeze:
        node_feats = node_feats[None]
        adj = adj[None]
    b, n, d = node_feats.shape
    num_layers = len(layer_params)

    np_pad = _round_up(max(n, LANE), LANE)   # node axis lane-dense / MXU-aligned
    dp_pad = _round_up(max(d, LANE), LANE)   # feature axis lane-dense

    feats_p = jnp.zeros((b, np_pad, dp_pad), jnp.float32)
    feats_p = feats_p.at[:, :n, :d].set(node_feats.astype(jnp.float32))
    adj_p = jnp.zeros((b, np_pad, np_pad), jnp.int8)
    adj_p = adj_p.at[:, :n, :n].set((adj > 0).astype(jnp.int8))

    wa, bias = _fold_layer_params(layer_params, d, dp_pad)

    if force_tiled or _fused_vmem_estimate(np_pad, dp_pad) > _FUSED_VMEM_BUDGET:
        out_p = jnp.stack(
            [_run_tiled(feats_p[g], adj_p[g], wa, bias, num_layers)
             for g in range(b)], axis=0)
    else:
        out_p = _run_fused(feats_p, adj_p, wa, bias, num_layers)

    out = out_p[:, :n, :d]
    return out[0] if squeeze else out


def archit_forward(node_feats, adj, layer_params, *, force_tiled=False):
    """GlobalAttentionLayer chain of ARCHIT.forward (global_att1..3).

    Mirrors the DGL semantics: g.ndata['h'] is the persistent node state used
    as messages; each layer overwrites it with the aggregated result and feeds
    it to the next layer's attention transform.
    """
    # TODO(synk): MPNNGNN trunk, the three DGL GATConv layers and
    # AttentiveFPReadout are not implemented (no self-contained reference code);
    # node_feats stands in for the trunk output feeding global_att1.
    return fused_global_attention_chain(node_feats, adj, layer_params,
                                        force_tiled=force_tiled)


# ---------------------------------------------------------------------------
# Pure-JAX reference (unfolded path) for correctness checking.
# ---------------------------------------------------------------------------
def reference_forward(node_feats, adj, layer_params):
    graph_h = node_feats
    h = node_feats
    for prm in layer_params:
        t = h @ prm["w"] + prm["bw"]                  # (N, Fout)
        e_src = t @ prm["aw"][0]                      # (N,)
        e_dst = t @ prm["aw"][1]                      # (N,)
        s = e_dst[:, None] + e_src[None, :] + prm["ab"][0, 0]
        s = jnp.where(s > 0, s, 0.2 * s)
        masked = jnp.where(adj > 0, s, -1e30)
        m = masked.max(axis=-1, keepdims=True)
        pm = jnp.where(adj > 0, jnp.exp(masked - m), 0.0)
        lsum = pm.sum(axis=-1, keepdims=True)
        alpha = pm / jnp.where(lsum > 0, lsum, 1.0)
        graph_h = alpha @ graph_h
        h = graph_h
    return h


# ---------------------------------------------------------------------------
# Parameter construction (matches the PyTorch module: xavier W/attn_w,
# default nn.Linear bias init (nonzero), zero attn_b).
# ---------------------------------------------------------------------------
def xavier_uniform(key, shape):
    fan_in, fan_out = shape[0], shape[1]
    limit = (6.0 / (fan_in + fan_out)) ** 0.5
    return jax.random.uniform(key, shape, jnp.float32, -limit, limit)


def make_layer_params(key, fin, fout):
    kw, ka, kb = jax.random.split(key, 3)
    w = xavier_uniform(kw, (fin, fout))                    # W.weight^T (in, out)
    bound = 1.0 / (fin ** 0.5)
    bw = jax.random.uniform(kb, (1, fout), jnp.float32, -bound, bound)  # W.bias
    attn_w = xavier_uniform(ka, (2 * fout, 1))             # (2*out, 1)
    aw = jnp.stack([attn_w[:fout, 0], attn_w[fout:, 0]], axis=0)        # (2, out)
    ab = jnp.zeros((1, 1), jnp.float32)                    # attn_b (zeros_)
    return dict(w=w, bw=bw, aw=aw, ab=ab)


if __name__ == "__main__":
    key = jax.random.PRNGKey(0)
    k_feat, k_feat2, k1, k2, k3 = jax.random.split(key, 5)

    # --- batched small graphs (fused single-kernel path) -------------------
    B, N, D = 2, 16, 16
    feats = jax.random.normal(k_feat, (B, N, D), jnp.float32)

    # graph 0: directed ring + self loops. adj[d, s] = 1 for s -> d.
    src = jnp.arange(N)
    dst = (src + 1) % N
    adj0 = jnp.zeros((N, N), jnp.float32).at[dst, src].set(1.0).at[src, src].set(1.0)
    # graph 1: star into node 0 + self loops; node N-1 fully isolated
    # (exercises the alpha == 0 / has_edge path).
    srcs1 = jnp.arange(1, N - 1)
    adj1 = jnp.zeros((N, N), jnp.float32)
    adj1 = adj1.at[0, srcs1].set(1.0).at[srcs1, srcs1].set(1.0).at[0, 0].set(1.0)
    adj_b = jnp.stack([adj0, adj1], axis=0)

    params = [
        make_layer_params(k1, D, D),   # global_att1
        make_layer_params(k2, D, D),   # global_att2
        make_layer_params(k3, D, D),   # global_att3
    ]

    out = jax.jit(archit_forward)(feats, adj_b, params)
    jax.block_until_ready(out)
    assert out.shape == (B, N, D)
    ref = jnp.stack([reference_forward(feats[g], adj_b[g], params)
                     for g in range(B)], axis=0)
    err_fused = float(jnp.max(jnp.abs(out - ref)))
    assert jnp.allclose(out, ref, rtol=3e-2, atol=5e-3), err_fused

    # --- larger single graph through the tiled / pipelined path ------------
    N2 = 200
    feats2 = jax.random.normal(k_feat2, (N2, D), jnp.float32)
    s2 = jnp.arange(N2)
    adj2 = (jnp.zeros((N2, N2), jnp.float32)
            .at[(s2 + 1) % N2, s2].set(1.0)
            .at[(s2 + 7) % N2, s2].set(1.0)
            .at[s2, s2].set(1.0))
    out2 = jax.jit(functools.partial(archit_forward, force_tiled=True))(
        feats2, adj2, params)
    jax.block_until_ready(out2)
    ref2 = reference_forward(feats2, adj2, params)
    err_tiled = float(jnp.max(jnp.abs(out2 - ref2)))
    assert jnp.allclose(out2, ref2, rtol=3e-2, atol=5e-3), err_tiled

    print("KERNEL_OK")
</pallas_src>

<mosaic_0001>
module attributes {stable_mosaic.version = 11 : i64} {
  func.func @_fused_global_attn_kernel(%arg0: i32, %arg1: memref<1x128x128xf32, #tpu.memory_space<vmem>>, %arg2: memref<1x128x128xi8, #tpu.memory_space<vmem>>, %arg3: memref<6x128xf32, #tpu.memory_space<vmem>>, %arg4: memref<3xf32, #tpu.memory_space<smem>>, %arg5: memref<1x128x128xf32, #tpu.memory_space<vmem>>) attributes {dimension_semantics = [#tpu.dimension_semantics<parallel>], iteration_bounds = array<i64: 2>, scalar_prefetch = 0 : i64, scratch_operands = 0 : i64, tpu.core_type = #tpu.core_type<tc>, window_params = [{transform_indices = @transform_0, window_bounds = array<i64: 1, 128, 128>}, {transform_indices = @transform_1, window_bounds = array<i64: 1, 128, 128>}, {pipeline_mode = #tpu.pipeline_mode<synchronous>, transform_indices = @transform_2, window_bounds = array<i64: 6, 128>}, {transform_indices = @transform_3, window_bounds = array<i64: 3>}, {transform_indices = @transform_4, window_bounds = array<i64: 1, 128, 128>}]} {
    %c0 = arith.constant 0 : index
    %c0_0 = arith.constant 0 : index
    %c0_1 = arith.constant 0 : index
    %0 = vector.load %arg1[%c0, %c0_0, %c0_1] : memref<1x128x128xf32, #tpu.memory_space<vmem>>, vector<1x128x128xf32>
    %1 = vector.shape_cast %0 : vector<1x128x128xf32> to vector<128x128xf32>
    %c0_2 = arith.constant 0 : index
    %c0_3 = arith.constant 0 : index
    %2 = vector.load %arg3[%c0_2, %c0_3] : memref<6x128xf32, #tpu.memory_space<vmem>>, vector<6x128xf32>
    %c0_4 = arith.constant 0 : index
    %c0_5 = arith.constant 0 : index
    %c0_6 = arith.constant 0 : index
    %3 = vector.load %arg2[%c0_4, %c0_5, %c0_6] : memref<1x128x128xi8, #tpu.memory_space<vmem>>, vector<1x128x128xi8>
    %4 = vector.shape_cast %3 : vector<1x128x128xi8> to vector<128x128xi8>
    %5 = arith.sitofp %4 : vector<128x128xi8> to vector<128x128xf32>
    %cst = arith.constant 0.000000e+00 : f32
    %6 = vector.broadcast %cst : f32 to vector<128x128xf32>
    %7 = arith.cmpf ogt, %5, %6 : vector<128x128xf32>
    %cst_7 = arith.constant 0.000000e+00 : f32
    %cst_8 = arith.constant -1.000000e+30 : f32
    %8 = vector.broadcast %cst_7 : f32 to vector<128x128xf32>
    %9 = vector.broadcast %cst_8 : f32 to vector<128x128xf32>
    %10 = arith.select %7, %8, %9 : vector<128x128xi1>, vector<128x128xf32>
    %cst_9 = arith.constant dense<0xFF800000> : vector<128xf32>
    %11 = vector.multi_reduction <maximumf>, %10, %cst_9 [1] : vector<128x128xf32> to vector<128xf32>
    %12 = vector.shape_cast %11 : vector<128xf32> to vector<128x1xf32>
    %cst_10 = arith.constant -5.000000e+29 : f32
    %13 = vector.broadcast %cst_10 : f32 to vector<128x1xf32>
    %14 = arith.cmpf ogt, %12, %13 : vector<128x1xf32>
    %15 = arith.extui %14 : vector<128x1xi1> to vector<128x1xi32>
    %16 = arith.sitofp %15 : vector<128x1xi32> to vector<128x1xf32>
    %17 = vector.extract_strided_slice %2 {offsets = [0, 0], sizes = [1, 128], strides = [1, 1]} : vector<6x128xf32> to vector<1x128xf32>
    %18 = vector.extract_strided_slice %2 {offsets = [1, 0], sizes = [1, 128], strides = [1, 1]} : vector<6x128xf32> to vector<1x128xf32>
    %c0_11 = arith.constant 0 : index
    %19 = memref.load %arg4[%c0_11] : memref<3xf32, #tpu.memory_space<smem>>
    %cst_12 = arith.constant dense<0.000000e+00> : vector<1x128xf32>
    %20 = tpu.matmul %17, %1, %cst_12 {dimension_numbers = #tpu.dot_dimension_numbers<[1], [1], [0], [0], [0, 0, 1, 0], [], []>} : vector<1x128xf32>, vector<128x128xf32>, vector<1x128xf32> -> vector<1x128xf32>
    %cst_13 = arith.constant dense<0.000000e+00> : vector<128x1xf32>
    %21 = tpu.matmul %1, %18, %cst_13 {dimension_numbers = #tpu.dot_dimension_numbers<[1], [1], [0], [0], [0, 0, 1, 0], [], []>} : vector<128x128xf32>, vector<1x128xf32>, vector<128x1xf32> -> vector<128x1xf32>
    %22 = vector.broadcast %21 : vector<128x1xf32> to vector<128x128xf32>
    %23 = vector.broadcast %20 : vector<1x128xf32> to vector<128x128xf32>
    %24 = arith.addf %22, %23 : vector<128x128xf32>
    %25 = vector.broadcast %19 : f32 to vector<128x128xf32>
    %26 = arith.addf %24, %25 : vector<128x128xf32>
    %cst_14 = arith.constant 2.000000e-01 : f32
    %27 = vector.broadcast %cst_14 : f32 to vector<128x128xf32>
    %28 = arith.mulf %27, %26 : vector<128x128xf32>
    %29 = arith.maximumf %26, %28 : vector<128x128xf32>
    %30 = arith.addf %29, %10 : vector<128x128xf32>
    %cst_15 = arith.constant dense<0xFF800000> : vector<128xf32>
    %31 = vector.multi_reduction <maximumf>, %30, %cst_15 [1] : vector<128x128xf32> to vector<128xf32>
    %32 = vector.shape_cast %31 : vector<128xf32> to vector<128x1xf32>
    %33 = vector.broadcast %32 : vector<128x1xf32> to vector<128x128xf32>
    %34 = arith.subf %30, %33 : vector<128x128xf32>
    %35 = math.exp %34 : vector<128x128xf32>
    %cst_16 = arith.constant dense<0.000000e+00> : vector<128xf32>
    %36 = vector.multi_reduction <add>, %35, %cst_16 [1] : vector<128x128xf32> to vector<128xf32>
    %37 = vector.shape_cast %36 : vector<128xf32> to vector<128x1xf32>
    %38 = tpu.reciprocal %37 {approx = true} : vector<128x1xf32> -> vector<128x1xf32>
    %39 = arith.mulf %38, %16 : vector<128x1xf32>
    %40 = vector.broadcast %39 : vector<128x1xf32> to vector<128x128xf32>
    %41 = arith.mulf %35, %40 : vector<128x128xf32>
    %42 = arith.truncf %41 : vector<128x128xf32> to vector<128x128xbf16>
    %43 = arith.truncf %1 : vector<128x128xf32> to vector<128x128xbf16>
    %cst_17 = arith.constant dense<0.000000e+00> : vector<128x128xf32>
    %44 = tpu.matmul %42, %43, %cst_17 {dimension_numbers = #tpu.dot_dimension_numbers<[1], [0], [0], [1], [0, 0, 1, 1], [], []>} : vector<128x128xbf16>, vector<128x128xbf16>, vector<128x128xf32> -> vector<128x128xf32>
    %45 = vector.extract_strided_slice %2 {offsets = [2, 0], sizes = [1, 128], strides = [1, 1]} : vector<6x128xf32> to vector<1x128xf32>
    %46 = vector.extract_strided_slice %2 {offsets = [3, 0], sizes = [1, 128], strides = [1, 1]} : vector<6x128xf32> to vector<1x128xf32>
    %c1 = arith.constant 1 : index
    %47 = memref.load %arg4[%c1] : memref<3xf32, #tpu.memory_space<smem>>
    %cst_18 = arith.constant dense<0.000000e+00> : vector<1x128xf32>
    %48 = tpu.matmul %45, %44, %cst_18 {dimension_numbers = #tpu.dot_dimension_numbers<[1], [1], [0], [0], [0, 0, 1, 0], [], []>} : vector<1x128xf32>, vector<128x128xf32>, vector<1x128xf32> -> vector<1x128xf32>
    %cst_19 = arith.constant dense<0.000000e+00> : vector<128x1xf32>
    %49 = tpu.matmul %44, %46, %cst_19 {dimension_numbers = #tpu.dot_dimension_numbers<[1], [1], [0], [0], [0, 0, 1, 0], [], []>} : vector<128x128xf32>, vector<1x128xf32>, vector<128x1xf32> -> vector<128x1xf32>
    %50 = vector.broadcast %49 : vector<128x1xf32> to vector<128x128xf32>
    %51 = vector.broadcast %48 : vector<1x128xf32> to vector<128x128xf32>
    %52 = arith.addf %50, %51 : vector<128x128xf32>
    %53 = vector.broadcast %47 : f32 to vector<128x128xf32>
    %54 = arith.addf %52, %53 : vector<128x128xf32>
    %cst_20 = arith.constant 2.000000e-01 : f32
    %55 = vector.broadcast %cst_20 : f32 to vector<128x128xf32>
    %56 = arith.mulf %55, %54 : vector<128x128xf32>
    %57 = arith.maximumf %54, %56 : vector<128x128xf32>
    %58 = arith.addf %57, %10 : vector<128x128xf32>
    %cst_21 = arith.constant dense<0xFF800000> : vector<128xf32>
    %59 = vector.multi_reduction <maximumf>, %58, %cst_21 [1] : vector<128x128xf32> to vector<128xf32>
    %60 = vector.shape_cast %59 : vector<128xf32> to vector<128x1xf32>
    %61 = vector.broadcast %60 : vector<128x1xf32> to vector<128x128xf32>
    %62 = arith.subf %58, %61 : vector<128x128xf32>
    %63 = math.exp %62 : vector<128x128xf32>
    %cst_22 = arith.constant dense<0.000000e+00> : vector<128xf32>
    %64 = vector.multi_reduction <add>, %63, %cst_22 [1] : vector<128x128xf32> to vector<128xf32>
    %65 = vector.shape_cast %64 : vector<128xf32> to vector<128x1xf32>
    %66 = tpu.reciprocal %65 {approx = true} : vector<128x1xf32> -> vector<128x1xf32>
    %67 = arith.mulf %66, %16 : vector<128x1xf32>
    %68 = vector.broadcast %67 : vector<128x1xf32> to vector<128x128xf32>
    %69 = arith.mulf %63, %68 : vector<128x128xf32>
    %70 = arith.truncf %69 : vector<128x128xf32> to vector<128x128xbf16>
    %71 = arith.truncf %44 : vector<128x128xf32> to vector<128x128xbf16>
    %cst_23 = arith.constant dense<0.000000e+00> : vector<128x128xf32>
    %72 = tpu.matmul %70, %71, %cst_23 {dimension_numbers = #tpu.dot_dimension_numbers<[1], [0], [0], [1], [0, 0, 1, 1], [], []>} : vector<128x128xbf16>, vector<128x128xbf16>, vector<128x128xf32> -> vector<128x128xf32>
    %73 = vector.extract_strided_slice %2 {offsets = [4, 0], sizes = [1, 128], strides = [1, 1]} : vector<6x128xf32> to vector<1x128xf32>
    %74 = vector.extract_strided_slice %2 {offsets = [5, 0], sizes = [1, 128], strides = [1, 1]} : vector<6x128xf32> to vector<1x128xf32>
    %c2 = arith.constant 2 : index
    %75 = memref.load %arg4[%c2] : memref<3xf32, #tpu.memory_space<smem>>
    %cst_24 = arith.constant dense<0.000000e+00> : vector<1x128xf32>
    %76 = tpu.matmul %73, %72, %cst_24 {dimension_numbers = #tpu.dot_dimension_numbers<[1], [1], [0], [0], [0, 0, 1, 0], [], []>} : vector<1x128xf32>, vector<128x128xf32>, vector<1x128xf32> -> vector<1x128xf32>
    %cst_25 = arith.constant dense<0.000000e+00> : vector<128x1xf32>
    %77 = tpu.matmul %72, %74, %cst_25 {dimension_numbers = #tpu.dot_dimension_numbers<[1], [1], [0], [0], [0, 0, 1, 0], [], []>} : vector<128x128xf32>, vector<1x128xf32>, vector<128x1xf32> -> vector<128x1xf32>
    %78 = vector.broadcast %77 : vector<128x1xf32> to vector<128x128xf32>
    %79 = vector.broadcast %76 : vector<1x128xf32> to vector<128x128xf32>
    %80 = arith.addf %78, %79 : vector<128x128xf32>
    %81 = vector.broadcast %75 : f32 to vector<128x128xf32>
    %82 = arith.addf %80, %81 : vector<128x128xf32>
    %cst_26 = arith.constant 2.000000e-01 : f32
    %83 = vector.broadcast %cst_26 : f32 to vector<128x128xf32>
    %84 = arith.mulf %83, %82 : vector<128x128xf32>
    %85 = arith.maximumf %82, %84 : vector<128x128xf32>
    %86 = arith.addf %85, %10 : vector<128x128xf32>
    %cst_27 = arith.constant dense<0xFF800000> : vector<128xf32>
    %87 = vector.multi_reduction <maximumf>, %86, %cst_27 [1] : vector<128x128xf32> to vector<128xf32>
    %88 = vector.shape_cast %87 : vector<128xf32> to vector<128x1xf32>
    %89 = vector.broadcast %88 : vector<128x1xf32> to vector<128x128xf32>
    %90 = arith.subf %86, %89 : vector<128x128xf32>
    %91 = math.exp %90 : vector<128x128xf32>
    %cst_28 = arith.constant dense<0.000000e+00> : vector<128xf32>
    %92 = vector.multi_reduction <add>, %91, %cst_28 [1] : vector<128x128xf32> to vector<128xf32>
    %93 = vector.shape_cast %92 : vector<128xf32> to vector<128x1xf32>
    %94 = tpu.reciprocal %93 {approx = true} : vector<128x1xf32> -> vector<128x1xf32>
    %95 = arith.mulf %94, %16 : vector<128x1xf32>
    %96 = vector.broadcast %95 : vector<128x1xf32> to vector<128x128xf32>
    %97 = arith.mulf %91, %96 : vector<128x128xf32>
    %98 = arith.truncf %97 : vector<128x128xf32> to vector<128x128xbf16>
    %99 = arith.truncf %72 : vector<128x128xf32> to vector<128x128xbf16>
    %cst_29 = arith.constant dense<0.000000e+00> : vector<128x128xf32>
    %100 = tpu.matmul %98, %99, %cst_29 {dimension_numbers = #tpu.dot_dimension_numbers<[1], [0], [0], [1], [0, 0, 1, 1], [], []>} : vector<128x128xbf16>, vector<128x128xbf16>, vector<128x128xf32> -> vector<128x128xf32>
    %c0_30 = arith.constant 0 : index
    %c0_31 = arith.constant 0 : index
    %c0_32 = arith.constant 0 : index
    %101 = vector.load %arg5[%c0_30, %c0_31, %c0_32] : memref<1x128x128xf32, #tpu.memory_space<vmem>>, vector<1x128x128xf32>
    %102 = vector.shape_cast %101 : vector<1x128x128xf32> to vector<128x128xf32>
    %103 = vector.shape_cast %100 : vector<128x128xf32> to vector<1x128x128xf32>
    tpu.vector_store %arg5[%c0_30, %c0_31, %c0_32], %103 {strides = array<i32>} : memref<1x128x128xf32, #tpu.memory_space<vmem>>, vector<1x128x128xf32>,
    return
  }
  func.func @transform_0(%arg0: i32) -> (i32, i32, i32) {
    %c0_i32 = arith.constant 0 : i32
    %c0_i32_0 = arith.constant 0 : i32
    %c0_i32_1 = arith.constant 0 : i32
    return %arg0, %c0_i32, %c0_i32_0 : i32, i32, i32
  }
  func.func @transform_1(%arg0: i32) -> (i32, i32, i32) {
    %c0_i32 = arith.constant 0 : i32
    %c0_i32_0 = arith.constant 0 : i32
    %c0_i32_1 = arith.constant 0 : i32
    return %arg0, %c0_i32, %c0_i32_0 : i32, i32, i32
  }
  func.func @transform_2(%arg0: i32) -> (i32, i32) {
    %c0_i32 = arith.constant 0 : i32
    %c0_i32_0 = arith.constant 0 : i32
    %c0_i32_1 = arith.constant 0 : i32
    return %c0_i32, %c0_i32_0 : i32, i32
  }
  func.func @transform_3(%arg0: i32) -> i32 {
    %c0_i32 = arith.constant 0 : i32
    %c0_i32_0 = arith.constant 0 : i32
    return %c0_i32 : i32
  }
  func.func @transform_4(%arg0: i32) -> (i32, i32, i32) {
    %c0_i32 = arith.constant 0 : i32
    %c0_i32_0 = arith.constant 0 : i32
    %c0_i32_1 = arith.constant 0 : i32
    return %arg0, %c0_i32, %c0_i32_0 : i32, i32, i32
  }
}

</mosaic_0001>

<bundles_post_ra>
// kernel: archit_forward.1
= control target key start
LH: loop header
LB: loop body
LE: loop exit
PB: predicated region body
PF: predicated region fallthrough
CT: control target
= control target key end

     0   :  { %9 = vsyncpa [#allocation3], 0  ;;  %s2622_s15 = smov 0   ;;  %s3540_s0 = inlined_call_operand.vmem [shape: f32[2,128,128], index: 0, kind: input, shape index: {}]   ;;  %s3541_s1 = inlined_call_operand.vmem [shape: s8[2,128,128], index: 1, kind: input, shape index: {}]   ;;  %s3542_s2 = inlined_call_operand.vmem [shape: f32[6,128], index: 2, kind: input, shape index: {}]   ;;  %s3543_s3 = inlined_call_operand.vmem [shape: f32[3], index: 3, kind: input, shape index: {}]   ;;  %s3544_s4 = inlined_call_operand.vmem [shape: f32[2,128,128], index: 4, kind: output, shape index: {}]  }
   0x1 LB: > { %s2628_s16 = sadd.s32 4294967295, %s2590_s15   ;;  %p1943_p0 = scmp.ge.s32.totalorder %s2590_s15, 1  ;;  %s2590_s15 = sphi %s2622_s15, %s15_s15  }
   0x2   : > { %p140_p1 = scmp.lt.s32.totalorder %s2590_s15, 3  ;;  %s156_s19 = sshll.u32 %s3543_s3, 4  ;;  %s157_s19 = int_to_ptr.vmem [resolvable:$true] %s156_s19 }
   0x3   : > { %p2357_p3 = scmp.eq.s32.totalorder %s2628_s16, 0  ;;  %s2565_s21 = scalar_lea.vmem %s157_s19, 16 }
   0x4   : > { %p2635_p2 = pnand %p1943_p0, %p140_p1  ;;  %p2566_p6 = scmp.ne.s32.totalorder %s157_s19, %s2565_s21 }
   0x5   : > { %p2573_p10 = scmp.lt.s32.totalorder %s157_s19, %s157_s19  ;;  %p2574_p11 = scmp.lt.s32.totalorder %s2565_s21, %s2565_s21 }
   0x6   : > { %p2353_p4 = pneg %p2635_p2 }
   0x7   : > { %p2575_p12 = por %p2574_p11, %p2573_p10 }
   0x8   : > { %p2354_p5 = pnand %p2357_p3, %p2353_p4 }
   0xa   : > { %p2567_p7 = pneg %p2354_p5 }
   0xc   : > { %p2568_p8 = pnand %p2567_p7, %p2566_p6 }
   0xe   : > { %p2569_p9 = pneg %p2568_p8 }
  0x10   : > { %p2576_p13 = pnand %p2575_p12, %p2569_p9 }
  0x12   : > { %2579 = shalt.err (!%p2576_p13)
}
  0x13   : > { %s2592_s22 = smov [#allocation2]   ;;  %185 = sbr.rel (%p2635_p2) target bundleno = 2535 (0x9e7), region = 36 }
  0x14   : > { %2356 = dma.vmem_to_smem (!%p2354_p5), %s157_s19, 16, %s2592_s22, [#allocation3]  }
  0x1a   : > { %2585 = dma.done.wait (%p2357_p3), [#allocation3], 16  }
  0x1b   : > { %2587 = vsyncadd (%p2357_p3), [#allocation3], 4294967280 }
  0x1c   : > { %191 = sfence }
  0x1d   : > { %p217_p0 = scmp.lt.s32.totalorder %s2628_s16, 1  ;;  %v469_v0 = vlaneseq  ;;  %v3545_v1 = vmov 0.0|0.0   ;;  %vm2594_vm0 = vmmov 0   ;;  %v3547_v2 = vmov 0.0   ;;  %v2671_v5 = vld [vmem:[%s3542_s2] sm:$0x3f] }
  0x1e   : > { %2277 = vmatprep.subr.bf16.mxu0 %v3545_v1  ;;  %2108 = vmatprep.mubr.msk.f32.mxu0 %vm2594_vm0, %v3547_v2  ;;  %s398_s7 = sld [smem:[#allocation2]]  ;;  %s1970_s10 = sld [smem:[#allocation2 + $0x1]] }
  0x1f   : > { %s3558_s16 = smov (!%p217_p0, %s2628_s16), 1  ;;  %v2657_v3 = vshrl.u32 %v469_v0, 7  ;;  %s1971_s11 = sld [smem:[#allocation2 + $0x2]] }
  0x20   : > { %s1974_s23 = sshll.u32 %s3558_s16, 7  ;;  %s1975_s29 = sshll.u32 %s3558_s16, 5 }
  0x21   : > { %v471_v4 = vsub.s32 1, %v2657_v3  ;;  %s2666_s26 = scalar_lea.vmem %s3540_s0, %s1974_s23  ;;  %s2721_s6 = scalar_lea.vmem %s3541_s1, %s1975_s29 }
  0x22   : > { %v233_v6 = vld [vmem:[%s2666_s26] sm:$0xff]  ;;  %v234_v7 = vld [vmem:[%s2666_s26 + $0x8] sm:$0xff]  ;;  %v235_v10 = vld [vmem:[%s2666_s26 + $0x10] sm:$0xff]  ;;  %s3519_s14 = scalar_lea.vmem %s3544_s4, %s1974_s23 }
  0x23   : > { %v2676_v8 = vrot.slane %v2671_v5, %v471_v4  ;;  %v2278_v9 = vpack.c.bf16 %v234_v7, %v233_v6  ;;  %v236_v13 = vld [vmem:[%s2666_s26 + $0x18] sm:$0xff]  ;;  %v238_v17 = vld [vmem:[%s2666_s26 + $0x28] sm:$0xff]  ;;  %v237_v18 = vld [vmem:[%s2666_s26 + $0x20] sm:$0xff]  ;;  %v2726_v4 = vsub.s32 0, %v2657_v3 }
  0x24   : > { %v2281_v16 = vpack.c.bf16 %v236_v13, %v235_v10  ;;  %v2284_v21 = vpack.c.bf16 %v238_v17, %v237_v18  ;;  %v239_v22 = vld [vmem:[%s2666_s26 + $0x30] sm:$0xff]  ;;  %v240_v23 = vld [vmem:[%s2666_s26 + $0x38] sm:$0xff]  ;;  %v242_v27 = vld [vmem:[%s2666_s26 + $0x48] sm:$0xff] }
  0x25   : > { %v475_v11 = vmul.f32 %v2676_v8, %v235_v10  ;;  %v473_v12 = vmul.f32 %v2676_v8, %v233_v6  ;;  %2279 = vmatpush3.bf16.xpose.msra.mxu0 %v2278_v9  ;;  %v476_v14 = vmul.f32 %v2676_v8, %v236_v13  ;;  %v474_v15 = vmul.f32 %v2676_v8, %v234_v7  ;;  %v241_v28 = vld [vmem:[%s2666_s26 + $0x40] sm:$0xff]  ;;  %v243_v32 = vld [vmem:[%s2666_s26 + $0x50] sm:$0xff]  ;;  %v244_v33 = vld [vmem:[%s2666_s26 + $0x58] sm:$0xff] }
  0x26   : > { %2280 = vmatprep.subr.bf16.mxu0 %v3545_v1  ;;  %2111 = vmatprep.subr.bf16.mxu1 %v2278_v9  ;;  %v478_v19 = vmul.f32 %v2676_v8, %v238_v17  ;;  %v477_v20 = vmul.f32 %v2676_v8, %v237_v18  ;;  %v480_v24 = vmul.f32 %v2676_v8, %v240_v23  ;;  %v246_v37 = vld [vmem:[%s2666_s26 + $0x68] sm:$0xff]  ;;  %v245_v38 = vld [vmem:[%s2666_s26 + $0x60] sm:$0xff]  ;;  %v247_v42 = vld [vmem:[%s2666_s26 + $0x70] sm:$0xff]  ;;  %v2596_v17 = vmov -1e+30  }
  0x27   : > { %493 = vadd.xlane.f32.xlu1 %v475_v11  ;;  %489 = vadd.xlane.f32.xlu0 %v473_v12  ;;  %v479_v25 = vmul.f32 %v2676_v8, %v239_v22  ;;  %v2287_v26 = vpack.c.bf16 %v240_v23, %v239_v22  ;;  %v482_v29 = vmul.f32 %v2676_v8, %v242_v27  ;;  %v248_v43 = vld [vmem:[%s2666_s26 + $0x78] sm:$0xff]  ;;  %v250_v53 = vld [vmem:[%s2721_s6] sm:$0xff]  ;;  %v251_v57 = vld [vmem:[%s2721_s6 + $0x8] sm:$0xff] }
  0x28   : > { %2112 = vmatpush3.bf16.msra.mxu1 %v2278_v9  ;;  %v481_v30 = vmul.f32 %v2676_v8, %v241_v28  ;;  %v2290_v31 = vpack.c.bf16 %v242_v27, %v241_v28  ;;  %v484_v34 = vmul.f32 %v2676_v8, %v244_v33  ;;  %v483_v35 = vmul.f32 %v2676_v8, %v243_v32 }
  0x29   : > { %2113 = vmatprep.subr.bf16.mxu1 %v2281_v16  ;;  %v2293_v36 = vpack.c.bf16 %v244_v33, %v243_v32  ;;  %v486_v39 = vmul.f32 %v2676_v8, %v246_v37  ;;  %v485_v40 = vmul.f32 %v2676_v8, %v245_v38  ;;  %v2296_v41 = vpack.c.bf16 %v246_v37, %v245_v38 }
  0x2a   : > { %v488_v44 = vmul.f32 %v2676_v8, %v248_v43  ;;  %v487_v45 = vmul.f32 %v2676_v8, %v247_v42  ;;  %v2299_v46 = vpack.c.bf16 %v248_v43, %v247_v42  ;;  %v255_v54 = vunpack.c.1.s8 %v250_v53 }
  0x2b   : > { %495 = vadd.xlane.f32.xlu1 %v476_v14  ;;  %491 = vadd.xlane.f32.xlu0 %v474_v15  ;;  %v254_v55 = vunpack.c.0.s8 %v250_v53  ;;  %v257_v56 = vunpack.c.3.s8 %v250_v53  ;;  %v256_v60 = vunpack.c.2.s8 %v250_v53  ;;  %v259_v0 = vunpack.c.1.s8 %v251_v57 }
  0x2c   : > { %2114 = vmatpush3.bf16.msra.mxu1 %v2281_v16  ;;  %v271_v61 = vcvt.s32.f32 %v255_v54  ;;  %v261_v6 = vunpack.c.3.s8 %v251_v57  ;;  %v2733_v14 = vstv %s398_s7  ;;  %v260_v23 = vunpack.c.2.s8 %v251_v57 }
  0x2d   : > { %2282 = vmatpush3.bf16.xpose.msra.mxu0 %v2281_v16  ;;  %2115 = vmatprep.subr.bf16.mxu1 %v2284_v21  ;;  %v270_v62 = vcvt.s32.f32 %v254_v55  ;;  %v273_v63 = vcvt.s32.f32 %v257_v56  ;;  %v272_v7 = vcvt.s32.f32 %v256_v60  ;;  %v275_v9 = vcvt.s32.f32 %v259_v0 }
  0x2e   : > { %2283 = vmatprep.subr.bf16.mxu0 %v3545_v1  ;;  %vm287_vm1 = vcmp.gt.f32.partialorder %v271_v61, 0.0  ;;  %v277_v16 = vcvt.s32.f32 %v261_v6  ;;  %v276_v43 = vcvt.s32.f32 %v260_v23 }
  0x2f   : > { %499 = vadd.xlane.f32.xlu1 %v478_v19  ;;  %497 = vadd.xlane.f32.xlu0 %v477_v20  ;;  %vm286_vm2 = vcmp.gt.f32.partialorder %v270_v62, 0.0  ;;  %vm289_vm3 = vcmp.gt.f32.partialorder %v273_v63, 0.0  ;;  %v2736_v18 = vsel %vm287_vm1, 0.0, %v2596_v17  ;;  %vm288_vm4 = vcmp.gt.f32.partialorder %v272_v7, 0.0 }
  0x30   : > { %2116 = vmatpush3.bf16.msra.mxu1 %v2284_v21  ;;  %v2739_v19 = vsel %vm286_vm2, 0.0, %v2596_v17  ;;  %v2742_v20 = vsel %vm289_vm3, 0.0, %v2596_v17  ;;  %vm291_vm5 = vcmp.gt.f32.partialorder %v275_v9, 0.0  ;;  %vm293_vm7 = vcmp.gt.f32.partialorder %v277_v16, 0.0 }
  0x31   : > { %2117 = vmatprep.subr.bf16.mxu1 %v2287_v26  ;;  %v2785_v61 = vsel %vm293_vm7, 0.0, %v2596_v17  ;;  %vm292_vm8 = vcmp.gt.f32.partialorder %v276_v43, 0.0 }
  0x33   : > { %503 = vadd.xlane.f32.xlu1 %v480_v24  ;;  %501 = vadd.xlane.f32.xlu0 %v479_v25 }
  0x34   : > { %2118 = vmatpush3.bf16.msra.mxu1 %v2287_v26 }
  0x35   : > { %2285 = vmatpush3.bf16.xpose.msra.mxu0 %v2284_v21  ;;  %2119 = vmatprep.subr.bf16.mxu1 %v2290_v31 }
  0x36   : > { %2286 = vmatprep.subr.bf16.mxu0 %v3545_v1 }
  0x37   : > { %507 = vadd.xlane.f32.xlu1 %v482_v29  ;;  %505 = vadd.xlane.f32.xlu0 %v481_v30  ;;  %v2753_v30 = vld [vmem:[%s2721_s6 + $0x10] sm:$0xff] }
  0x38   : > { %2120 = vmatpush3.bf16.msra.mxu1 %v2290_v31  ;;  %v262_v62 = vunpack.c.0.s8 %v2753_v30  ;;  %v265_v23 = vunpack.c.3.s8 %v2753_v30 }
  0x39   : > { %2121 = vmatprep.subr.bf16.mxu1 %v2293_v36 }
  0x3a   : > { %v281_v43 = vcvt.s32.f32 %v265_v23 }
  0x3b   : > { %511 = vadd.xlane.f32.xlu1 %v484_v34  ;;  %509 = vadd.xlane.f32.xlu0 %v483_v35 }
  0x3c   : > { %2122 = vmatpush3.bf16.msra.mxu1 %v2293_v36  ;;  %vm297_vm11 = vcmp.gt.f32.partialorder %v281_v43, 0.0 }
  0x3d   : > { %2288 = vmatpush3.bf16.xpose.msra.mxu0 %v2287_v26  ;;  %2123 = vmatprep.subr.bf16.mxu1 %v2296_v41 }
  0x3e   : > { %2289 = vmatprep.subr.bf16.mxu0 %v3545_v1 }
  0x3f   : > { %515 = vadd.xlane.f32.xlu1 %v486_v39  ;;  %513 = vadd.xlane.f32.xlu0 %v485_v40 }
  0x40   : > { %2124 = vmatpush3.bf16.msra.mxu1 %v2296_v41 }
  0x41   : > { %2125 = vmatprep.subr.bf16.mxu1 %v2299_v46 }
  0x43   : > { %519 = vadd.xlane.f32.xlu1 %v488_v44  ;;  %517 = vadd.xlane.f32.xlu0 %v487_v45  ;;  %v263_v44 = vunpack.c.1.s8 %v2753_v30 }
  0x44   : > { %2126 = vmatpush3.bf16.msra.mxu1 %v2299_v46 }
  0x45   : > { %2291 = vmatpush3.bf16.xpose.msra.mxu0 %v2290_v31  ;;  %2301 = vmatprep.subr.bf16.mxu1 %v3545_v1 }
  0x46   : > { %2292 = vmatprep.subr.bf16.mxu0 %v3545_v1 }
  0x4d   : > { %2294 = vmatpush3.bf16.xpose.msra.mxu0 %v2293_v36 }
  0x4e   : > { %2295 = vmatprep.subr.bf16.mxu0 %v3545_v1 }
  0x55   : > { %2297 = vmatpush3.bf16.xpose.msra.mxu0 %v2296_v41 }
  0x56   : > { %2298 = vmatprep.subr.bf16.mxu0 %v3545_v1 }
  0x5d   : > { %2300 = vmatpush3.bf16.xpose.msra.mxu0 %v2299_v46 }
  0x64   : > { %2109 = vmatmul.mubr.f32.vlgmr.msra.gmra.mrb[0].mxu0 %v2671_v5  ;;  %v258_v5 = vunpack.c.0.s8 %v251_v57 }
  0x66   : > { %v274_v15 = vcvt.s32.f32 %v258_v5  ;;  %v279_v5 = vcvt.s32.f32 %v263_v44 }
  0x68   : > { %vm290_vm6 = vcmp.gt.f32.partialorder %v274_v15, 0.0  ;;  %vm295_vm9 = vcmp.gt.f32.partialorder %v279_v5, 0.0 }
  0x69   : > { %v2781_v60 = vsel %vm290_vm6, 0.0, %v2596_v17 }
  0x6a   : > { %3551 = vst [vmem:[#allocation5_spill] sm:$0xff] %v2781_v60 }
  0xb4   : > { %v494_v47 = vpop.xlane.xlu1 %493  ;;  %v490_v48 = vpop.xlane.xlu0 %489 }
  0xb8   : > { %v496_v49 = vpop.xlane.xlu1 %495  ;;  %v492_v50 = vpop.xlane.xlu0 %491 }
  0xbc   : > { %v500_v51 = vpop.xlane.xlu1 %499  ;;  %v498_v52 = vpop.xlane.xlu0 %497 }
  0xc0   : > { %v504_v58 = vpop.xlane.xlu1 %503  ;;  %v502_v59 = vpop.xlane.xlu0 %501 }
  0xc4   : > { %v508_v8 = vpop.xlane.xlu1 %507  ;;  %v2728_v10 = vpop.xlane.xlu0 %505 }
  0xc8   : > { %v512_v31 = vpop.xlane.xlu1 %511  ;;  %v510_v32 = vpop.xlane.xlu0 %509 }
  0xcc   : > { %v516_v57 = vpop.xlane.xlu1 %515 }
 0x137   : > { %v465_v11 = vpop.f32.mrb[0].mxu0 }
 0x138   : > { %v2731_v12 = vrot.slane %v465_v11, %v2726_v4  ;;  %v2110_v13 = vpop.f32.mrb[1].mxu0 }
 0x13a   : > { %v526_v21 = vadd.f32 %v2731_v12, %v492_v50  ;;  %v525_v22 = vadd.f32 %v2731_v12, %v490_v48  ;;  %v528_v24 = vadd.f32 %v2731_v12, %v496_v49  ;;  %v527_v25 = vadd.f32 %v2731_v12, %v494_v47 }
 0x13b   : > { %v530_v26 = vadd.f32 %v2731_v12, %v500_v51  ;;  %v529_v27 = vadd.f32 %v2731_v12, %v498_v52  ;;  %v532_v39 = vadd.f32 %v2731_v12, %v504_v58  ;;  %v531_v40 = vadd.f32 %v2731_v12, %v502_v59  ;;  %v514_v58 = vpop.xlane.xlu0 %513 }
 0x13c   : > { %v543_v28 = vadd.f32 %v2733_v14, %v526_v21  ;;  %v542_v29 = vadd.f32 %v2733_v14, %v525_v22  ;;  %v545_v33 = vadd.f32 %v2733_v14, %v528_v24  ;;  %v544_v34 = vadd.f32 %v2733_v14, %v527_v25 }
 0x13d   : > { %v547_v35 = vadd.f32 %v2733_v14, %v530_v26  ;;  %v546_v36 = vadd.f32 %v2733_v14, %v529_v27  ;;  %v2764_v49 = vsel %vm288_vm4, 0.0, %v2596_v17  ;;  %v549_v50 = vadd.f32 %v2733_v14, %v532_v39  ;;  %v253_v27 = vld [vmem:[%s2721_s6 + $0x18] sm:$0xff] }
 0x13e   : > { %v559_v37 = vmul.f32 0.2, %v543_v28  ;;  %v558_v38 = vmul.f32 0.2, %v542_v29  ;;  %v561_v41 = vmul.f32 0.2, %v545_v33  ;;  %v548_v51 = vadd.f32 %v2733_v14, %v531_v40 }
 0x13f   : > { %v560_v42 = vmul.f32 0.2, %v544_v34  ;;  %v563_v47 = vmul.f32 0.2, %v547_v35  ;;  %v562_v48 = vmul.f32 0.2, %v546_v36  ;;  %v534_v52 = vadd.f32 %v2731_v12, %v508_v8 }
 0x140   : > { %v575_v45 = vmax.f32 %v543_v28, %v559_v37  ;;  %v574_v46 = vmax.f32 %v542_v29, %v558_v38  ;;  %v577_v55 = vmax.f32 %v545_v33, %v561_v41  ;;  %v2777_v59 = vsel %vm291_vm5, 0.0, %v2596_v17  ;;  %v520_v28 = vpop.xlane.xlu1 %519  ;;  %v518_v29 = vpop.xlane.xlu0 %517 }
 0x141   : > { %v576_v56 = vmax.f32 %v544_v34, %v560_v42  ;;  %v579_v63 = vmax.f32 %v547_v35, %v563_v47  ;;  %v578_v0 = vmax.f32 %v546_v36, %v562_v48  ;;  %v565_v6 = vmul.f32 0.2, %v549_v50 }
 0x142   : > { %v2770_v53 = vadd.f32 %v575_v45, %v2736_v18  ;;  %v2773_v54 = vadd.f32 %v574_v46, %v2739_v19  ;;  %v564_v7 = vmul.f32 0.2, %v548_v51  ;;  %v551_v8 = vadd.f32 %v2733_v14, %v534_v52 }
 0x143   : > { %v533_v9 = vadd.f32 %v2731_v12, %v2728_v10  ;;  %v2794_v11 = vadd.f32 %v577_v55, %v2742_v20  ;;  %v2797_v13 = vadd.f32 %v576_v56, %v2764_v49  ;;  %v536_v15 = vadd.f32 %v2731_v12, %v512_v31 }
 0x144   : > { %608 = vmax.xlane.f32.xlu1 %v2770_v53  ;;  %606 = vmax.xlane.f32.xlu0 %v2773_v54  ;;  %v535_v16 = vadd.f32 %v2731_v12, %v510_v32  ;;  %v278_v21 = vcvt.s32.f32 %v262_v62  ;;  %v264_v24 = vunpack.c.2.s8 %v2753_v30  ;;  %v2807_v10 = vadd.f32 %v579_v63, %v2777_v59 }
 0x145   : > { %v550_v22 = vadd.f32 %v2733_v14, %v533_v9  ;;  %v2810_v25 = vadd.f32 %v578_v0, %v2781_v60  ;;  %v2814_v26 = vsel %vm292_vm8, 0.0, %v2596_v17  ;;  %v581_v31 = vmax.f32 %v549_v50, %v565_v6 }
 0x146   : > { %v580_v30 = vmax.f32 %v548_v51, %v564_v7  ;;  %v567_v32 = vmul.f32 0.2, %v551_v8  ;;  %v538_v33 = vadd.f32 %v2731_v12, %v516_v57  ;;  %v553_v35 = vadd.f32 %v2733_v14, %v536_v15 }
 0x147   : > { %v566_v34 = vmul.f32 0.2, %v550_v22  ;;  %v552_v36 = vadd.f32 %v2733_v14, %v535_v16  ;;  %v537_v37 = vadd.f32 %v2731_v12, %v514_v58  ;;  %v2822_v38 = vsel %vm295_vm9, 0.0, %v2596_v17 }
 0x148   : > { %612 = vmax.xlane.f32.xlu1 %v2794_v11  ;;  %610 = vmax.xlane.f32.xlu0 %v2797_v13  ;;  %vm294_vm10 = vcmp.gt.f32.partialorder %v278_v21, 0.0  ;;  %v267_v39 = vunpack.c.1.s8 %v253_v27  ;;  %v266_v40 = vunpack.c.0.s8 %v253_v27  ;;  %v540_v41 = vadd.f32 %v2731_v12, %v520_v28 }
 0x149   : > { %v539_v42 = vadd.f32 %v2731_v12, %v518_v29  ;;  %v280_v44 = vcvt.s32.f32 %v264_v24  ;;  %v2829_v45 = vadd.f32 %v581_v31, %v2785_v61  ;;  %v2832_v46 = vadd.f32 %v580_v30, %v2814_v26 }
 0x14a   : > { %v583_v47 = vmax.f32 %v551_v8, %v567_v32  ;;  %v555_v48 = vadd.f32 %v2733_v14, %v538_v33  ;;  %v582_v50 = vmax.f32 %v550_v22, %v566_v34  ;;  %v569_v51 = vmul.f32 0.2, %v553_v35 }
 0x14b   : > { %v568_v52 = vmul.f32 0.2, %v552_v36  ;;  %v554_v12 = vadd.f32 %v2733_v14, %v537_v37  ;;  %v2838_v55 = vsel %vm294_vm10, 0.0, %v2596_v17  ;;  %v283_v56 = vcvt.s32.f32 %v267_v39 }
 0x14c   : > { %616 = vmax.xlane.f32.xlu1 %v2807_v10  ;;  %614 = vmax.xlane.f32.xlu0 %v2810_v25  ;;  %3552 = vst [vmem:[#allocation6_spill] sm:$0xff] %v2838_v55  ;;  %v282_v57 = vcvt.s32.f32 %v266_v40  ;;  %vm296_vm12 = vcmp.gt.f32.partialorder %v280_v44, 0.0  ;;  %v269_v58 = vunpack.c.3.s8 %v253_v27  ;;  %v268_v62 = vunpack.c.2.s8 %v253_v27 }
 0x14d   : > { %v557_v63 = vadd.f32 %v2733_v14, %v540_v41  ;;  %v556_v0 = vadd.f32 %v2733_v14, %v539_v42  ;;  %v2845_v5 = vadd.f32 %v583_v47, %v2822_v38  ;;  %v571_v6 = vmul.f32 0.2, %v555_v48 }
 0x14e   : > { %v2848_v7 = vadd.f32 %v582_v50, %v2838_v55  ;;  %v585_v8 = vmax.f32 %v553_v35, %v569_v51  ;;  %v584_v9 = vmax.f32 %v552_v36, %v568_v52  ;;  %v570_v15 = vmul.f32 0.2, %v554_v12 }
 0x14f   : > { %v2851_v16 = vsel %vm297_vm11, 0.0, %v2596_v17  ;;  %v2854_v21 = vsel %vm296_vm12, 0.0, %v2596_v17  ;;  %vm299_vm13 = vcmp.gt.f32.partialorder %v283_v56, 0.0  ;;  %vm298_vm14 = vcmp.gt.f32.partialorder %v282_v57, 0.0 }
 0x150   : > { %620 = vmax.xlane.f32.xlu1 %v2829_v45  ;;  %618 = vmax.xlane.f32.xlu0 %v2832_v46  ;;  %v285_v14 = vcvt.s32.f32 %v269_v58  ;;  %v284_v22 = vcvt.s32.f32 %v268_v62  ;;  %v573_v23 = vmul.f32 0.2, %v557_v63  ;;  %v572_v24 = vmul.f32 0.2, %v556_v0 }
 0x151   : > { %v2859_v27 = vadd.f32 %v585_v8, %v2851_v16  ;;  %v2862_v28 = vadd.f32 %v584_v9, %v2854_v21  ;;  %v587_v29 = vmax.f32 %v555_v48, %v571_v6  ;;  %v586_v31 = vmax.f32 %v554_v12, %v570_v15 }
 0x152   : > { %v2865_v30 = vsel %vm299_vm13, 0.0, %v2596_v17  ;;  %v2868_v32 = vsel %vm298_vm14, 0.0, %v2596_v17  ;;  %vm301_vm15 = vcmp.gt.f32.partialorder %v285_v14, 0.0  ;;  %vm300_vm1 = vcmp.gt.f32.partialorder %v284_v22, 0.0 }
 0x153   : > { %v2873_v33 = vadd.f32 %v587_v29, %v2865_v30  ;;  %v2876_v34 = vadd.f32 %v586_v31, %v2868_v32  ;;  %v589_v35 = vmax.f32 %v557_v63, %v573_v23  ;;  %v588_v36 = vmax.f32 %v556_v0, %v572_v24 }
 0x154   : > { %624 = vmax.xlane.f32.xlu1 %v2845_v5  ;;  %622 = vmax.xlane.f32.xlu0 %v2848_v7  ;;  %v2879_v37 = vsel %vm301_vm15, 0.0, %v2596_v17  ;;  %v2882_v39 = vsel %vm300_vm1, 0.0, %v2596_v17 }
 0x155   : > { %v2887_v40 = vadd.f32 %v589_v35, %v2879_v37  ;;  %v2890_v41 = vadd.f32 %v588_v36, %v2882_v39 }
 0x158   : > { %628 = vmax.xlane.f32.xlu1 %v2859_v27  ;;  %626 = vmax.xlane.f32.xlu0 %v2862_v28 }
 0x15c   : > { %632 = vmax.xlane.f32.xlu1 %v2873_v33  ;;  %630 = vmax.xlane.f32.xlu0 %v2876_v34 }
 0x160   : > { %636 = vmax.xlane.f32.xlu1 %v2887_v40  ;;  %634 = vmax.xlane.f32.xlu0 %v2890_v41 }
 0x1d1   : > { %v609_v42 = vpop.xlane.xlu1 %608  ;;  %v607_v43 = vpop.xlane.xlu0 %606 }
 0x1d2   : > { %v639_v44 = vsub.f32 %v2770_v53, %v609_v42  ;;  %v638_v17 = vsub.f32 %v2773_v54, %v607_v43 }
 0x1d4   : > { %v656_v47 = vmul.f32 1.442695, %v639_v44  ;;  %v654_v48 = vmul.f32 1.442695, %v638_v17 }
 0x1d5   : > { %v613_v50 = vpop.xlane.xlu1 %612  ;;  %v611_v51 = vpop.xlane.xlu0 %610 }
 0x1d6   : > { %2372 = vpow2.f32 %v656_v47  ;;  %v641_v52 = vsub.f32 %v2794_v11, %v613_v50  ;;  %v640_v12 = vsub.f32 %v2797_v13, %v611_v51 }
 0x1d7   : > { %2374 = vpow2.f32 %v654_v48 }
 0x1d8   : > { %v660_v56 = vmul.f32 1.442695, %v641_v52  ;;  %v658_v57 = vmul.f32 1.442695, %v640_v12 }
 0x1d9   : > { %v617_v58 = vpop.xlane.xlu1 %616  ;;  %v615_v62 = vpop.xlane.xlu0 %614 }
 0x1da   : > { %2376 = vpow2.f32 %v660_v56  ;;  %v643_v53 = vsub.f32 %v2807_v10, %v617_v58  ;;  %v642_v54 = vsub.f32 %v2810_v25, %v615_v62 }
 0x1db   : > { %2378 = vpow2.f32 %v658_v57 }
 0x1dc   : > { %v664_v11 = vmul.f32 1.442695, %v643_v53  ;;  %v662_v9 = vmul.f32 1.442695, %v642_v54 }
 0x1dd   : > { %v621_v63 = vpop.xlane.xlu1 %620  ;;  %v619_v6 = vpop.xlane.xlu0 %618 }
 0x1de   : > { %v645_v13 = vsub.f32 %v2829_v45, %v621_v63  ;;  %v644_v15 = vsub.f32 %v2832_v46, %v619_v6  ;;  %2380 = vpow2.f32 %v664_v11 }
 0x1df   : > { %2382 = vpow2.f32 %v662_v9 }
 0x1e0   : > { %v2900_v0 = vpop.eup %2372  ;;  %v668_v25 = vmul.f32 1.442695, %v645_v13  ;;  %v666_v22 = vmul.f32 1.442695, %v644_v15 }
 0x1e1   : > { %v2902_v8 = vpop.eup %2374  ;;  %688 = vadd.xlane.f32.xlu1 %v2900_v0  ;;  %v625_v23 = vpop.xlane.xlu1 %624 }
 0x1e2   : > { %686 = vadd.xlane.f32.xlu0 %v2902_v8  ;;  %2384 = vpow2.f32 %v668_v25  ;;  %v623_v45 = vpop.xlane.xlu0 %622  ;;  %v647_v46 = vsub.f32 %v2845_v5, %v625_v23 }
 0x1e3   : > { %2386 = vpow2.f32 %v666_v22  ;;  %v646_v24 = vsub.f32 %v2848_v7, %v623_v45 }
 0x1e4   : > { %v2908_v14 = vpop.eup %2376  ;;  %v672_v42 = vmul.f32 1.442695, %v647_v46 }
 0x1e5   : > { %v2910_v10 = vpop.eup %2378  ;;  %692 = vadd.xlane.f32.xlu1 %v2908_v14  ;;  %v629_v29 = vpop.xlane.xlu1 %628  ;;  %v670_v44 = vmul.f32 1.442695, %v646_v24 }
 0x1e6   : > { %690 = vadd.xlane.f32.xlu0 %v2910_v10  ;;  %v627_v35 = vpop.xlane.xlu0 %626  ;;  %v649_v43 = vsub.f32 %v2859_v27, %v629_v29  ;;  %2388 = vpow2.f32 %v672_v42 }
 0x1e7   : > { %v648_v5 = vsub.f32 %v2862_v28, %v627_v35  ;;  %2390 = vpow2.f32 %v670_v44 }
 0x1e8   : > { %v2920_v31 = vpop.eup %2380  ;;  %v676_v7 = vmul.f32 1.442695, %v649_v43 }
 0x1e9   : > { %320 = vmax.xlane.f32.xlu1 %v2736_v18  ;;  %v2922_v36 = vpop.eup %2382  ;;  %v674_v48 = vmul.f32 1.442695, %v648_v5  ;;  %v633_v50 = vpop.xlane.xlu1 %632 }
 0x1ea   : > { %318 = vmax.xlane.f32.xlu0 %v2739_v19  ;;  %2392 = vpow2.f32 %v676_v7  ;;  %v631_v27 = vpop.xlane.xlu0 %630  ;;  %v651_v28 = vsub.f32 %v2873_v33, %v633_v50 }
 0x1eb   : > { %2394 = vpow2.f32 %v674_v48  ;;  %v650_v51 = vsub.f32 %v2876_v34, %v631_v27 }
 0x1ec   : > { %v2928_v17 = vpop.eup %2384  ;;  %v680_v58 = vmul.f32 1.442695, %v651_v28 }
 0x1ed   : > { %324 = vmax.xlane.f32.xlu1 %v2742_v20  ;;  %v2930_v47 = vpop.eup %2386  ;;  %v637_v52 = vpop.xlane.xlu1 %636  ;;  %v678_v53 = vmul.f32 1.442695, %v650_v51 }
 0x1ee   : > { %322 = vmax.xlane.f32.xlu0 %v2764_v49  ;;  %v635_v56 = vpop.xlane.xlu0 %634  ;;  %v653_v62 = vsub.f32 %v2887_v40, %v637_v52  ;;  %2396 = vpow2.f32 %v680_v58 }
 0x1ef   : > { %v652_v33 = vsub.f32 %v2890_v41, %v635_v56  ;;  %2398 = vpow2.f32 %v678_v53 }
 0x1f0   : > { %v2940_v12 = vpop.eup %2388  ;;  %v684_v34 = vmul.f32 1.442695, %v653_v62 }
 0x1f1   : > { %696 = vadd.xlane.f32.xlu1 %v2920_v31  ;;  %v2942_v57 = vpop.eup %2390  ;;  %v682_v6 = vmul.f32 1.442695, %v652_v33 }
 0x1f2   : > { %694 = vadd.xlane.f32.xlu0 %v2922_v36  ;;  %2400 = vpow2.f32 %v684_v34 }
 0x1f3   : > { %2402 = vpow2.f32 %v682_v6 }
 0x1f4   : > { %v2948_v54 = vpop.eup %2392 }
 0x1f5   : > { %700 = vadd.xlane.f32.xlu1 %v2928_v17  ;;  %v2950_v63 = vpop.eup %2394 }
 0x1f6   : > { %698 = vadd.xlane.f32.xlu0 %v2930_v47 }
 0x1f8   : > { %v2958_v40 = vpop.eup %2396 }
 0x1f9   : > { %328 = vmax.xlane.f32.xlu1 %v2777_v59  ;;  %v2960_v41 = vpop.eup %2398 }
 0x1fa   : > { %326 = vmax.xlane.f32.xlu0 %v2781_v60 }
 0x1fc   : > { %v2964_v11 = vpop.eup %2400 }
 0x1fd   : > { %332 = vmax.xlane.f32.xlu1 %v2785_v61  ;;  %v2966_v13 = vpop.eup %2402 }
 0x1fe   : > { %330 = vmax.xlane.f32.xlu0 %v2814_v26 }
 0x201   : > { %704 = vadd.xlane.f32.xlu1 %v2940_v12 }
 0x202   : > { %702 = vadd.xlane.f32.xlu0 %v2942_v57 }
 0x205   : > { %708 = vadd.xlane.f32.xlu1 %v2948_v54 }
 0x206   : > { %706 = vadd.xlane.f32.xlu0 %v2950_v63 }
 0x209   : > { %336 = vmax.xlane.f32.xlu1 %v2822_v38 }
 0x20a   : > { %334 = vmax.xlane.f32.xlu0 %v2838_v55 }
 0x20d   : > { %340 = vmax.xlane.f32.xlu1 %v2851_v16 }
 0x20e   : > { %338 = vmax.xlane.f32.xlu0 %v2854_v21 }
 0x211   : > { %712 = vadd.xlane.f32.xlu1 %v2958_v40 }
 0x212   : > { %710 = vadd.xlane.f32.xlu0 %v2960_v41 }
 0x215   : > { %716 = vadd.xlane.f32.xlu1 %v2964_v11 }
 0x216   : > { %714 = vadd.xlane.f32.xlu0 %v2966_v13 }
 0x219   : > { %344 = vmax.xlane.f32.xlu1 %v2865_v30 }
 0x21a   : > { %342 = vmax.xlane.f32.xlu0 %v2868_v32 }
 0x21d   : > { %348 = vmax.xlane.f32.xlu1 %v2879_v37 }
 0x21e   : > { %346 = vmax.xlane.f32.xlu0 %v2882_v39 }
 0x26e   : > { %v689_v9 = vpop.xlane.xlu1 %688 }
 0x26f   : > { %2404 = vrcp.f32 %v689_v9  ;;  %v687_v15 = vpop.xlane.xlu0 %686 }
 0x270   : > { %2406 = vrcp.f32 %v687_v15 }
 0x272   : > { %v693_v25 = vpop.xlane.xlu1 %692 }
 0x273   : > { %2408 = vrcp.f32 %v693_v25  ;;  %v691_v22 = vpop.xlane.xlu0 %690 }
 0x274   : > { %2410 = vrcp.f32 %v691_v22 }
 0x276   : > { %v321_v23 = vpop.xlane.xlu1 %320 }
 0x277   : > { %vm351_vm2 = vcmp.gt.f32.partialorder %v321_v23, -5e+29  ;;  %v319_v45 = vpop.xlane.xlu0 %318 }
 0x278   : > { %v2975_v46 = vsel %vm351_vm2, 1.0, %v3547_v2  ;;  %vm350_vm3 = vcmp.gt.f32.partialorder %v319_v45, -5e+29 }
 0x279   : > { %v2405_v24 = vpop.eup %2404  ;;  %v2978_v29 = vsel %vm350_vm3, 1.0, %v3547_v2 }
 0x27a   : > { %v2407_v35 = vpop.eup %2406  ;;  %v325_v42 = vpop.xlane.xlu1 %324  ;;  %v735_v43 = vmul.f32 %v2405_v24, %v2975_v46 }
 0x27b   : > { %vm353_vm4 = vcmp.gt.f32.partialorder %v325_v42, -5e+29  ;;  %v323_v44 = vpop.xlane.xlu0 %322  ;;  %v734_v5 = vmul.f32 %v2407_v35, %v2978_v29 }
 0x27c   : > { %v2983_v7 = vsel %vm353_vm4, 1.0, %v3547_v2  ;;  %vm352_vm5 = vcmp.gt.f32.partialorder %v323_v44, -5e+29  ;;  %v751_v48 = vmul.f32 %v2900_v0, %v735_v43 }
 0x27d   : > { %v2409_v50 = vpop.eup %2408  ;;  %v2987_v27 = vsel %vm352_vm5, 1.0, %v3547_v2  ;;  %v750_v28 = vmul.f32 %v2902_v8, %v734_v5 }
 0x27e   : > { %v2411_v51 = vpop.eup %2410  ;;  %v737_v52 = vmul.f32 %v2409_v50, %v2983_v7  ;;  %v697_v56 = vpop.xlane.xlu1 %696 }
 0x27f   : > { %v736_v58 = vmul.f32 %v2411_v51, %v2987_v27  ;;  %2412 = vrcp.f32 %v697_v56  ;;  %v695_v62 = vpop.xlane.xlu0 %694  ;;  %v766_v53 = vpack.c.bf16 %v751_v48, %v750_v28 }
 0x280   : > { %2414 = vrcp.f32 %v695_v62  ;;  %v753_v33 = vmul.f32 %v2908_v14, %v737_v52 }
 0x281   : > { %2127 = vmatprep.mubr.bf16.mxu1 %v766_v53  ;;  %v752_v0 = vmul.f32 %v2910_v10, %v736_v58 }
 0x282   : > { %v701_v34 = vpop.xlane.xlu1 %700 }
 0x283   : > { %2416 = vrcp.f32 %v701_v34  ;;  %v699_v6 = vpop.xlane.xlu0 %698  ;;  %v767_v9 = vpack.c.bf16 %v753_v33, %v752_v0 }
 0x284   : > { %2418 = vrcp.f32 %v699_v6 }
 0x285   : > { %2128 = vmatmul.mubr.bf16.vlgmr.msra.gmra.mrb[0].mxu1 %v767_v9 }
 0x286   : > { %v329_v8 = vpop.xlane.xlu1 %328 }
 0x287   : > { %vm355_vm6 = vcmp.gt.f32.partialorder %v329_v8, -5e+29  ;;  %v327_v15 = vpop.xlane.xlu0 %326 }
 0x288   : > { %v2995_v25 = vsel %vm355_vm6, 1.0, %v3547_v2  ;;  %vm354_vm7 = vcmp.gt.f32.partialorder %v327_v15, -5e+29 }
 0x289   : > { %v2413_v22 = vpop.eup %2412  ;;  %v2998_v23 = vsel %vm354_vm7, 1.0, %v3547_v2 }
 0x28a   : > { %v2415_v14 = vpop.eup %2414  ;;  %v739_v10 = vmul.f32 %v2413_v22, %v2995_v25  ;;  %v333_v45 = vpop.xlane.xlu1 %332 }
 0x28b   : > { %v738_v24 = vmul.f32 %v2415_v14, %v2998_v23  ;;  %vm357_vm8 = vcmp.gt.f32.partialorder %v333_v45, -5e+29  ;;  %v331_v35 = vpop.xlane.xlu0 %330 }
 0x28c   : > { %v3003_v42 = vsel %vm357_vm8, 1.0, %v3547_v2  ;;  %vm356_vm9 = vcmp.gt.f32.partialorder %v331_v35, -5e+29  ;;  %v755_v43 = vmul.f32 %v2920_v31, %v739_v10 }
 0x28d   : > { %v2417_v44 = vpop.eup %2416  ;;  %v3007_v5 = vsel %vm356_vm9, 1.0, %v3547_v2  ;;  %v754_v48 = vmul.f32 %v2922_v36, %v738_v24 }
 0x28e   : > { %v2419_v50 = vpop.eup %2418  ;;  %v741_v28 = vmul.f32 %v2417_v44, %v3003_v42  ;;  %v705_v51 = vpop.xlane.xlu1 %704 }
 0x28f   : > { %v740_v52 = vmul.f32 %v2419_v50, %v3007_v5  ;;  %2420 = vrcp.f32 %v705_v51  ;;  %v703_v56 = vpop.xlane.xlu0 %702  ;;  %v768_v58 = vpack.c.bf16 %v755_v43, %v754_v48 }
 0x290   : > { %2422 = vrcp.f32 %v703_v56  ;;  %v757_v62 = vmul.f32 %v2928_v17, %v741_v28 }
 0x291   : > { %2131 = vmatprep.mubr.bf16.mxu1 %v768_v58  ;;  %v756_v31 = vmul.f32 %v2930_v47, %v740_v52 }
 0x292   : > { %v709_v53 = vpop.xlane.xlu1 %708 }
 0x293   : > { %2424 = vrcp.f32 %v709_v53  ;;  %v707_v33 = vpop.xlane.xlu0 %706  ;;  %v769_v0 = vpack.c.bf16 %v757_v62, %v756_v31 }
 0x294   : > { %2426 = vrcp.f32 %v707_v33 }
 0x295   : > { %2132 = vmatmul.mubr.bf16.gmra.mrb[4].mxu1 %v769_v0 }
 0x296   : > { %v337_v36 = vpop.xlane.xlu1 %336 }
 0x297   : > { %vm359_vm10 = vcmp.gt.f32.partialorder %v337_v36, -5e+29  ;;  %v335_v34 = vpop.xlane.xlu0 %334 }
 0x298   : > { %v3015_v6 = vsel %vm359_vm10, 1.0, %v3547_v2  ;;  %vm358_vm11 = vcmp.gt.f32.partialorder %v335_v34, -5e+29 }
 0x299   : > { %v2421_v9 = vpop.eup %2420  ;;  %v3018_v8 = vsel %vm358_vm11, 1.0, %v3547_v2 }
 0x29a   : > { %v2423_v17 = vpop.eup %2422  ;;  %v743_v47 = vmul.f32 %v2421_v9, %v3015_v6  ;;  %v341_v15 = vpop.xlane.xlu1 %340 }
 0x29b   : > { %v742_v22 = vmul.f32 %v2423_v17, %v3018_v8  ;;  %vm361_vm12 = vcmp.gt.f32.partialorder %v341_v15, -5e+29  ;;  %v339_v14 = vpop.xlane.xlu0 %338 }
 0x29c   : > { %v3023_v10 = vsel %vm361_vm12, 1.0, %v3547_v2  ;;  %vm360_vm13 = vcmp.gt.f32.partialorder %v339_v14, -5e+29  ;;  %v759_v45 = vmul.f32 %v2940_v12, %v743_v47 }
 0x29d   : > { %v2425_v24 = vpop.eup %2424  ;;  %v3027_v35 = vsel %vm360_vm13, 1.0, %v3547_v2  ;;  %v758_v43 = vmul.f32 %v2942_v57, %v742_v22 }
 0x29e   : > { %v2427_v44 = vpop.eup %2426  ;;  %v745_v48 = vmul.f32 %v2425_v24, %v3023_v10  ;;  %v713_v50 = vpop.xlane.xlu1 %712 }
 0x29f   : > { %v744_v28 = vmul.f32 %v2427_v44, %v3027_v35  ;;  %2428 = vrcp.f32 %v713_v50  ;;  %v711_v51 = vpop.xlane.xlu0 %710  ;;  %v770_v52 = vpack.c.bf16 %v759_v45, %v758_v43 }
 0x2a0   : > { %2430 = vrcp.f32 %v711_v51  ;;  %v761_v56 = vmul.f32 %v2948_v54, %v745_v48 }
 0x2a1   : > { %2135 = vmatprep.mubr.bf16.mxu1 %v770_v52  ;;  %v760_v12 = vmul.f32 %v2950_v63, %v744_v28 }
 0x2a2   : > { %v717_v58 = vpop.xlane.xlu1 %716 }
 0x2a3   : > { %2432 = vrcp.f32 %v717_v58  ;;  %v715_v62 = vpop.xlane.xlu0 %714  ;;  %v771_v31 = vpack.c.bf16 %v761_v56, %v760_v12 }
 0x2a4   : > { %2434 = vrcp.f32 %v715_v62 }
 0x2a5   : > { %2136 = vmatmul.mubr.bf16.gmra.mrb[8].mxu1 %v771_v31 }
 0x2a6   : > { %v345_v57 = vpop.xlane.xlu1 %344 }
 0x2a7   : > { %vm363_vm14 = vcmp.gt.f32.partialorder %v345_v57, -5e+29  ;;  %v343_v53 = vpop.xlane.xlu0 %342 }
 0x2a8   : > { %v3035_v33 = vsel %vm363_vm14, 1.0, %v3547_v2  ;;  %vm362_vm15 = vcmp.gt.f32.partialorder %v343_v53, -5e+29 }
 0x2a9   : > { %v2429_v0 = vpop.eup %2428  ;;  %v3038_v36 = vsel %vm362_vm15, 1.0, %v3547_v2 }
 0x2aa   : > { %v2431_v54 = vpop.eup %2430  ;;  %v747_v63 = vmul.f32 %v2429_v0, %v3035_v33  ;;  %v349_v34 = vpop.xlane.xlu1 %348 }
 0x2ab   : > { %v746_v9 = vmul.f32 %v2431_v54, %v3038_v36  ;;  %vm365_vm1 = vcmp.gt.f32.partialorder %v349_v34, -5e+29  ;;  %v347_v17 = vpop.xlane.xlu0 %346 }
 0x2ac   : > { %v3043_v47 = vsel %vm365_vm1, 1.0, %v3547_v2  ;;  %vm364_vm2 = vcmp.gt.f32.partialorder %v347_v17, -5e+29  ;;  %v763_v15 = vmul.f32 %v2958_v40, %v747_v63  ;;  %v955_v40 = vsub.s32 3, %v2657_v3 }
 0x2ad   : > { %v2433_v22 = vpop.eup %2432  ;;  %v3047_v14 = vsel %vm364_vm2, 1.0, %v3547_v2  ;;  %v762_v45 = vmul.f32 %v2960_v41, %v746_v9  ;;  %v3060_v41 = vld [vmem:[%s3542_s2] sm:$0x3f] }
 0x2ae   : > { %v2435_v24 = vpop.eup %2434  ;;  %v749_v43 = vmul.f32 %v2433_v22, %v3043_v47  ;;  %v3063_v52 = vrot.slane %v3060_v41, %v955_v40 }
 0x2af   : > { %v748_v44 = vmul.f32 %v2435_v24, %v3047_v14  ;;  %v772_v48 = vpack.c.bf16 %v763_v15, %v762_v45 }
 0x2b0   : > { %v765_v50 = vmul.f32 %v2964_v11, %v749_v43 }
 0x2b1   : > { %v764_v28 = vmul.f32 %v2966_v13, %v748_v44  ;;  %2139 = vmatprep.mubr.bf16.mxu1 %v772_v48 }
 0x2b3   : > { %v773_v51 = vpack.c.bf16 %v765_v50, %v764_v28 }
 0x2b5   : > { %2140 = vmatmul.mubr.bf16.gmra.mrb[12].mxu1 %v773_v51 }
 0x2b6   : > { %2175 = vmatprep.mubr.msk.f32.mxu1 %vm2594_vm0, %v3547_v2 }
 0x358   : > { %v2129_v56 = vpop.f32.mrb[0].mxu1 }
 0x359   : > { %v816_v11 = vpop.f32.mrb[1].mxu1  ;;  %v959_v53 = vmul.f32 %v2129_v56, %v3063_v52 }
 0x35a   : > { %v2130_v12 = vpop.f32.mrb[2].mxu1  ;;  %v957_v13 = vmul.f32 %v3063_v52, %v816_v11 }
 0x35b   : > { %v2305_v58 = vpack.c.bf16 %v2130_v12, %v2129_v56  ;;  %v819_v62 = vpop.f32.mrb[3].mxu1  ;;  %v960_v0 = vmul.f32 %v2130_v12, %v3063_v52 }
 0x35c   : > { %v2302_v31 = vpack.c.bf16 %v819_v62, %v816_v11  ;;  %973 = vadd.xlane.f32.xlu0 %v957_v13  ;;  %v958_v57 = vmul.f32 %v3063_v52, %v819_v62 }
 0x35e   : > { %975 = vadd.xlane.f32.xlu1 %v958_v57  ;;  %2303 = vmatpush3.bf16.xpose.msra.mxu1 %v2302_v31 }
 0x35f   : > { %2178 = vmatprep.subr.bf16.mxu0 %v2302_v31  ;;  %2304 = vmatprep.subr.bf16.mxu1 %v3545_v1 }
 0x360   : > { %2179 = vmatpush3.bf16.msra.mxu0 %v2302_v31  ;;  %977 = vadd.xlane.f32.xlu0 %v959_v53 }
 0x361   : > { %2180 = vmatprep.subr.bf16.mxu0 %v2305_v58 }
 0x362   : > { %979 = vadd.xlane.f32.xlu1 %v960_v0 }
 0x364   : > { %2181 = vmatpush3.bf16.msra.mxu0 %v2305_v58 }
 0x366   : > { %2306 = vmatpush3.bf16.xpose.msra.mxu1 %v2305_v58 }
 0x367   : > { %2307 = vmatprep.subr.bf16.mxu1 %v3545_v1 }
 0x368   : > { %v2133_v54 = vpop.f32.mrb[4].mxu1 }
 0x369   : > { %v832_v63 = vpop.f32.mrb[5].mxu1  ;;  %v963_v24 = vmul.f32 %v2133_v54, %v3063_v52 }
 0x36a   : > { %v2134_v34 = vpop.f32.mrb[6].mxu1  ;;  %v961_v9 = vmul.f32 %v3063_v52, %v832_v63 }
 0x36b   : > { %v2311_v17 = vpack.c.bf16 %v2134_v34, %v2133_v54  ;;  %v835_v15 = vpop.f32.mrb[7].mxu1  ;;  %v964_v43 = vmul.f32 %v2134_v34, %v3063_v52 }
 0x36c   : > { %v2308_v22 = vpack.c.bf16 %v835_v15, %v832_v63  ;;  %981 = vadd.xlane.f32.xlu0 %v961_v9  ;;  %v962_v45 = vmul.f32 %v3063_v52, %v835_v15 }
 0x36e   : > { %983 = vadd.xlane.f32.xlu1 %v962_v45  ;;  %2309 = vmatpush3.bf16.xpose.msra.mxu1 %v2308_v22 }
 0x36f   : > { %2182 = vmatprep.subr.bf16.mxu0 %v2308_v22  ;;  %2310 = vmatprep.subr.bf16.mxu1 %v3545_v1 }
 0x370   : > { %2183 = vmatpush3.bf16.msra.mxu0 %v2308_v22  ;;  %985 = vadd.xlane.f32.xlu0 %v963_v24 }
 0x371   : > { %2184 = vmatprep.subr.bf16.mxu0 %v2311_v17 }
 0x372   : > { %987 = vadd.xlane.f32.xlu1 %v964_v43 }
 0x374   : > { %2185 = vmatpush3.bf16.msra.mxu0 %v2311_v17 }
 0x376   : > { %2312 = vmatpush3.bf16.xpose.msra.mxu1 %v2311_v17  ;;  %v881_v17 = vrot.slane %v3060_v41, 2 }
 0x377   : > { %2313 = vmatprep.subr.bf16.mxu1 %v3545_v1 }
 0x378   : > { %v2137_v44 = vpop.f32.mrb[8].mxu1 }
 0x379   : > { %v848_v48 = vpop.f32.mrb[9].mxu1  ;;  %v967_v12 = vmul.f32 %v2137_v44, %v3063_v52 }
 0x37a   : > { %v2138_v50 = vpop.f32.mrb[10].mxu1  ;;  %v965_v28 = vmul.f32 %v3063_v52, %v848_v48 }
 0x37b   : > { %v2317_v51 = vpack.c.bf16 %v2138_v50, %v2137_v44  ;;  %v851_v40 = vpop.f32.mrb[11].mxu1  ;;  %v968_v13 = vmul.f32 %v2138_v50, %v3063_v52 }
 0x37c   : > { %v2314_v56 = vpack.c.bf16 %v851_v40, %v848_v48  ;;  %989 = vadd.xlane.f32.xlu0 %v965_v28  ;;  %v966_v11 = vmul.f32 %v3063_v52, %v851_v40  ;;  %v3093_v40 = vstv %s1970_s10 }
 0x37e   : > { %991 = vadd.xlane.f32.xlu1 %v966_v11  ;;  %2315 = vmatpush3.bf16.xpose.msra.mxu1 %v2314_v56 }
 0x37f   : > { %2186 = vmatprep.subr.bf16.mxu0 %v2314_v56  ;;  %2316 = vmatprep.subr.bf16.mxu1 %v3545_v1 }
 0x380   : > { %2187 = vmatpush3.bf16.msra.mxu0 %v2314_v56  ;;  %993 = vadd.xlane.f32.xlu0 %v967_v12 }
 0x381   : > { %2188 = vmatprep.subr.bf16.mxu0 %v2317_v51 }
 0x382   : > { %995 = vadd.xlane.f32.xlu1 %v968_v13 }
 0x384   : > { %2189 = vmatpush3.bf16.msra.mxu0 %v2317_v51 }
 0x386   : > { %2318 = vmatpush3.bf16.xpose.msra.mxu1 %v2317_v51 }
 0x387   : > { %2319 = vmatprep.subr.bf16.mxu1 %v3545_v1 }
 0x388   : > { %v2141_v58 = vpop.f32.mrb[12].mxu1 }
 0x389   : > { %v864_v62 = vpop.f32.mrb[13].mxu1  ;;  %v971_v34 = vmul.f32 %v2141_v58, %v3063_v52 }
 0x38a   : > { %v2142_v31 = vpop.f32.mrb[14].mxu1  ;;  %v969_v57 = vmul.f32 %v3063_v52, %v864_v62 }
 0x38b   : > { %v2323_v53 = vpack.c.bf16 %v2142_v31, %v2141_v58  ;;  %v867_v0 = vpop.f32.mrb[15].mxu1  ;;  %v972_v9 = vmul.f32 %v2142_v31, %v3063_v52 }
 0x38c   : > { %v2320_v54 = vpack.c.bf16 %v867_v0, %v864_v62  ;;  %997 = vadd.xlane.f32.xlu0 %v969_v57  ;;  %v970_v63 = vmul.f32 %v3063_v52, %v867_v0 }
 0x38e   : > { %999 = vadd.xlane.f32.xlu1 %v970_v63  ;;  %2321 = vmatpush3.bf16.xpose.msra.mxu1 %v2320_v54 }
 0x38f   : > { %2190 = vmatprep.subr.bf16.mxu0 %v2320_v54  ;;  %2322 = vmatprep.subr.bf16.mxu1 %v3545_v1 }
 0x390   : > { %2191 = vmatpush3.bf16.msra.mxu0 %v2320_v54  ;;  %1001 = vadd.xlane.f32.xlu0 %v971_v34 }
 0x391   : > { %2192 = vmatprep.subr.bf16.mxu0 %v2323_v53 }
 0x392   : > { %1003 = vadd.xlane.f32.xlu1 %v972_v9 }
 0x394   : > { %2193 = vmatpush3.bf16.msra.mxu0 %v2323_v53 }
 0x395   : > { %2325 = vmatprep.subr.bf16.mxu0 %v3545_v1 }
 0x396   : > { %2324 = vmatpush3.bf16.xpose.msra.mxu1 %v2323_v53 }
 0x39d   : > { %2176 = vmatmul.mubr.f32.vlgmr.msra.gmra.mrb[16].mxu1 %v881_v17 }
 0x3e9   : > { %v974_v22 = vpop.xlane.xlu0 %973 }
 0x3eb   : > { %v976_v15 = vpop.xlane.xlu1 %975 }
 0x3ed   : > { %v978_v24 = vpop.xlane.xlu0 %977 }
 0x3ef   : > { %v980_v45 = vpop.xlane.xlu1 %979 }
 0x3f9   : > { %v982_v44 = vpop.xlane.xlu0 %981 }
 0x3fb   : > { %v984_v43 = vpop.xlane.xlu1 %983 }
 0x3fd   : > { %v986_v51 = vpop.xlane.xlu0 %985 }
 0x3ff   : > { %v988_v50 = vpop.xlane.xlu1 %987 }
 0x409   : > { %v990_v9 = vpop.xlane.xlu0 %989 }
 0x40b   : > { %v992_v53 = vpop.xlane.xlu1 %991 }
 0x470   : > { %v949_v48 = vpop.f32.mrb[16].mxu1 }
 0x471   : > { %v3091_v52 = vrot.slane %v949_v48, %v2726_v4  ;;  %v2177_v28 = vpop.f32.mrb[17].mxu1 }
 0x473   : > { %v1010_v56 = vadd.f32 %v3091_v52, %v976_v15  ;;  %v1009_v11 = vadd.f32 %v3091_v52, %v974_v22  ;;  %v1012_v12 = vadd.f32 %v3091_v52, %v980_v45  ;;  %v1011_v13 = vadd.f32 %v3091_v52, %v978_v24 }
 0x474   : > { %v1014_v58 = vadd.f32 %v3091_v52, %v984_v43  ;;  %v1013_v62 = vadd.f32 %v3091_v52, %v982_v44  ;;  %v1016_v31 = vadd.f32 %v3091_v52, %v988_v50  ;;  %v1015_v57 = vadd.f32 %v3091_v52, %v986_v51 }
 0x475   : > { %v1027_v0 = vadd.f32 %v3093_v40, %v1010_v56  ;;  %v1026_v54 = vadd.f32 %v3093_v40, %v1009_v11  ;;  %v1029_v63 = vadd.f32 %v3093_v40, %v1012_v12  ;;  %v1028_v34 = vadd.f32 %v3093_v40, %v1011_v13  ;;  %v996_v13 = vpop.xlane.xlu1 %995 }
 0x476   : > { %v1031_v17 = vadd.f32 %v3093_v40, %v1014_v58  ;;  %v1030_v15 = vadd.f32 %v3093_v40, %v1013_v62  ;;  %v1033_v50 = vadd.f32 %v3093_v40, %v1016_v31  ;;  %v1032_v28 = vadd.f32 %v3093_v40, %v1015_v57 }
 0x477   : > { %v1043_v22 = vmul.f32 0.2, %v1027_v0  ;;  %v1042_v45 = vmul.f32 0.2, %v1026_v54  ;;  %v1045_v24 = vmul.f32 0.2, %v1029_v63  ;;  %v1018_v11 = vadd.f32 %v3091_v52, %v992_v53 }
 0x478   : > { %v1044_v43 = vmul.f32 0.2, %v1028_v34  ;;  %v1047_v51 = vmul.f32 0.2, %v1031_v17  ;;  %v1046_v56 = vmul.f32 0.2, %v1030_v15  ;;  %v1017_v12 = vadd.f32 %v3091_v52, %v990_v9 }
 0x479   : > { %v1059_v44 = vmax.f32 %v1027_v0, %v1043_v22  ;;  %v1058_v48 = vmax.f32 %v1026_v54, %v1042_v45  ;;  %v1061_v1 = vmax.f32 %v1029_v63, %v1045_v24  ;;  %v994_v54 = vpop.xlane.xlu0 %993  ;;  %v1049_v31 = vmul.f32 0.2, %v1033_v50 }
 0x47a   : > { %v1060_v0 = vmax.f32 %v1028_v34, %v1044_v43  ;;  %v1048_v57 = vmul.f32 0.2, %v1032_v28  ;;  %v1063_v22 = vmax.f32 %v1031_v17, %v1047_v51  ;;  %v1062_v53 = vmax.f32 %v1030_v15, %v1046_v56 }
 0x47b   : > { %v3114_v58 = vadd.f32 %v1059_v44, %v2736_v18  ;;  %v3117_v62 = vadd.f32 %v1058_v48, %v2739_v19  ;;  %v1035_v9 = vadd.f32 %v3093_v40, %v1018_v11  ;;  %v1034_v45 = vadd.f32 %v3093_v40, %v1017_v12  ;;  %v1000_v44 = vpop.xlane.xlu1 %999 }
 0x47c   : > { %v3124_v2 = vadd.f32 %v1061_v1, %v2742_v20  ;;  %v3127_v63 = vadd.f32 %v1060_v0, %v2764_v49  ;;  %v1020_v34 = vadd.f32 %v3091_v52, %v996_v13  ;;  %v1019_v24 = vadd.f32 %v3091_v52, %v994_v54 }
 0x47d   : > { %1092 = vmax.xlane.f32.xlu1 %v3114_v58  ;;  %1090 = vmax.xlane.f32.xlu0 %v3117_v62  ;;  %v998_v43 = vpop.xlane.xlu0 %997  ;;  %v1065_v17 = vmax.f32 %v1033_v50, %v1049_v31  ;;  %v1064_v15 = vmax.f32 %v1032_v28, %v1048_v57  ;;  %v3134_v48 = vadd.f32 %v1063_v22, %v2777_v59  ;;  %v1051_v51 = vmul.f32 0.2, %v1035_v9 }
 0x47e   : > { %v1050_v1 = vmul.f32 0.2, %v1034_v45  ;;  %v1022_v56 = vadd.f32 %v3091_v52, %v1000_v44  ;;  %v3138_v11 = vadd.f32 %v1062_v53, %v2781_v60  ;;  %v1037_v12 = vadd.f32 %v3093_v40, %v1020_v34 }
 0x47f   : > { %v1036_v13 = vadd.f32 %v3093_v40, %v1019_v24  ;;  %v1021_v0 = vadd.f32 %v3091_v52, %v998_v43  ;;  %v1004_v54 = vpop.xlane.xlu1 %1003  ;;  %v3146_v50 = vadd.f32 %v1065_v17, %v2785_v61  ;;  %v3149_v28 = vadd.f32 %v1064_v15, %v2814_v26 }
 0x480   : > { %v1067_v57 = vmax.f32 %v1035_v9, %v1051_v51  ;;  %v1066_v22 = vmax.f32 %v1034_v45, %v1050_v1  ;;  %v1039_v53 = vadd.f32 %v3093_v40, %v1022_v56  ;;  %v1024_v44 = vadd.f32 %v3091_v52, %v1004_v54 }
 0x481   : > { %1096 = vmax.xlane.f32.xlu1 %v3124_v2  ;;  %1094 = vmax.xlane.f32.xlu0 %v3127_v63  ;;  %v1002_v31 = vpop.xlane.xlu0 %1001  ;;  %v1053_v34 = vmul.f32 0.2, %v1037_v12  ;;  %v1052_v24 = vmul.f32 0.2, %v1036_v13  ;;  %v1038_v43 = vadd.f32 %v3093_v40, %v1021_v0 }
 0x482   : > { %v1023_v60 = vadd.f32 %v3091_v52, %v1002_v31  ;;  %v3158_v17 = vadd.f32 %v1067_v57, %v2822_v38  ;;  %v3161_v9 = vadd.f32 %v1066_v22, %v2838_v55  ;;  %v1055_v45 = vmul.f32 0.2, %v1039_v53 }
 0x483   : > { %v1041_v15 = vadd.f32 %v3093_v40, %v1024_v44  ;;  %v1069_v51 = vmax.f32 %v1037_v12, %v1053_v34  ;;  %v1068_v1 = vmax.f32 %v1036_v13, %v1052_v24  ;;  %v1054_v56 = vmul.f32 0.2, %v1038_v43 }
 0x484   : > { %v1040_v0 = vadd.f32 %v3093_v40, %v1023_v60  ;;  %v1071_v52 = vmax.f32 %v1039_v53, %v1055_v45 }
 0x485   : > { %1100 = vmax.xlane.f32.xlu1 %v3134_v48  ;;  %1098 = vmax.xlane.f32.xlu0 %v3138_v11  ;;  %v1057_v54 = vmul.f32 0.2, %v1041_v15  ;;  %v3168_v31 = vadd.f32 %v1069_v51, %v2851_v16  ;;  %v3171_v57 = vadd.f32 %v1068_v1, %v2854_v21  ;;  %v1070_v22 = vmax.f32 %v1038_v43, %v1054_v56 }
 0x486   : > { %v1056_v55 = vmul.f32 0.2, %v1040_v0  ;;  %v3176_v60 = vadd.f32 %v1071_v52, %v2865_v30 }
 0x487   : > { %v3179_v40 = vadd.f32 %v1070_v22, %v2868_v32  ;;  %v1073_v12 = vmax.f32 %v1041_v15, %v1057_v54 }
 0x488   : > { %v1072_v13 = vmax.f32 %v1040_v0, %v1056_v55 }
 0x489   : > { %1104 = vmax.xlane.f32.xlu1 %v3146_v50  ;;  %1102 = vmax.xlane.f32.xlu0 %v3149_v28  ;;  %v3184_v53 = vadd.f32 %v1073_v12, %v2879_v37 }
 0x48a   : > { %v3187_v44 = vadd.f32 %v1072_v13, %v2882_v39 }
 0x48d   : > { %1108 = vmax.xlane.f32.xlu1 %v3158_v17  ;;  %1106 = vmax.xlane.f32.xlu0 %v3161_v9 }
 0x491   : > { %1112 = vmax.xlane.f32.xlu1 %v3168_v31  ;;  %1110 = vmax.xlane.f32.xlu0 %v3171_v57 }
 0x495   : > { %1116 = vmax.xlane.f32.xlu1 %v3176_v60  ;;  %1114 = vmax.xlane.f32.xlu0 %v3179_v40 }
 0x499   : > { %1120 = vmax.xlane.f32.xlu1 %v3184_v53  ;;  %1118 = vmax.xlane.f32.xlu0 %v3187_v44 }
 0x50a   : > { %v1093_v34 = vpop.xlane.xlu1 %1092  ;;  %v1091_v24 = vpop.xlane.xlu0 %1090 }
 0x50b   : > { %v1123_v43 = vsub.f32 %v3114_v58, %v1093_v34  ;;  %v1122_v55 = vsub.f32 %v3117_v62, %v1091_v24 }
 0x50d   : > { %v1140_v45 = vmul.f32 1.442695, %v1123_v43  ;;  %v1138_v15 = vmul.f32 1.442695, %v1122_v55 }
 0x50e   : > { %v1097_v51 = vpop.xlane.xlu1 %1096  ;;  %v1095_v1 = vpop.xlane.xlu0 %1094 }
 0x50f   : > { %2436 = vpow2.f32 %v1140_v45  ;;  %v1125_v56 = vsub.f32 %v3124_v2, %v1097_v51  ;;  %v1124_v0 = vsub.f32 %v3127_v63, %v1095_v1 }
 0x510   : > { %2438 = vpow2.f32 %v1138_v15 }
 0x511   : > { %v1144_v52 = vmul.f32 1.442695, %v1125_v56  ;;  %v1142_v54 = vmul.f32 1.442695, %v1124_v0 }
 0x512   : > { %v1101_v22 = vpop.xlane.xlu1 %1100  ;;  %v1099_v12 = vpop.xlane.xlu0 %1098 }
 0x513   : > { %2440 = vpow2.f32 %v1144_v52  ;;  %v1127_v13 = vsub.f32 %v3134_v48, %v1101_v22  ;;  %v1126_v58 = vsub.f32 %v3138_v11, %v1099_v12 }
 0x514   : > { %2442 = vpow2.f32 %v1142_v54 }
 0x515   : > { %v1148_v62 = vmul.f32 1.442695, %v1127_v13  ;;  %v1146_v34 = vmul.f32 1.442695, %v1126_v58 }
 0x516   : > { %v1105_v24 = vpop.xlane.xlu1 %1104  ;;  %v1103_v43 = vpop.xlane.xlu0 %1102 }
 0x517   : > { %2444 = vpow2.f32 %v1148_v62  ;;  %v1129_v2 = vsub.f32 %v3146_v50, %v1105_v24  ;;  %v1128_v63 = vsub.f32 %v3149_v28, %v1103_v43 }
 0x518   : > { %2446 = vpow2.f32 %v1146_v34 }
 0x519   : > { %v3199_v55 = vpop.eup %2436  ;;  %v1152_v45 = vmul.f32 1.442695, %v1129_v2  ;;  %v1150_v15 = vmul.f32 1.442695, %v1128_v63 }
 0x51a   : > { %v3201_v51 = vpop.eup %2438  ;;  %1172 = vadd.xlane.f32.xlu1 %v3199_v55  ;;  %v1109_v48 = vpop.xlane.xlu1 %1108 }
 0x51b   : > { %v1107_v11 = vpop.xlane.xlu0 %1106  ;;  %2448 = vpow2.f32 %v1152_v45  ;;  %v1131_v1 = vsub.f32 %v3158_v17, %v1109_v48  ;;  %1170 = vadd.xlane.f32.xlu0 %v3201_v51 }
 0x51c   : > { %v1130_v50 = vsub.f32 %v3161_v9, %v1107_v11  ;;  %2450 = vpow2.f32 %v1150_v15 }
 0x51d   : > { %v3207_v28 = vpop.eup %2440  ;;  %v1156_v56 = vmul.f32 1.442695, %v1131_v1 }
 0x51e   : > { %v1154_v0 = vmul.f32 1.442695, %v1130_v50  ;;  %v3209_v52 = vpop.eup %2442  ;;  %1176 = vadd.xlane.f32.xlu1 %v3207_v28  ;;  %v1113_v54 = vpop.xlane.xlu1 %1112 }
 0x51f   : > { %v1111_v22 = vpop.xlane.xlu0 %1110  ;;  %2452 = vpow2.f32 %v1156_v56  ;;  %v1133_v12 = vsub.f32 %v3168_v31, %v1113_v54  ;;  %1174 = vadd.xlane.f32.xlu0 %v3209_v52 }
 0x520   : > { %v1132_v17 = vsub.f32 %v3171_v57, %v1111_v22  ;;  %2454 = vpow2.f32 %v1154_v0 }
 0x521   : > { %v3215_v9 = vpop.eup %2444  ;;  %v1160_v13 = vmul.f32 1.442695, %v1133_v12 }
 0x522   : > { %v1158_v58 = vmul.f32 1.442695, %v1132_v17  ;;  %v3217_v62 = vpop.eup %2446  ;;  %1180 = vadd.xlane.f32.xlu1 %v3215_v9  ;;  %v1117_v34 = vpop.xlane.xlu1 %1116 }
 0x523   : > { %v1115_v24 = vpop.xlane.xlu0 %1114  ;;  %2456 = vpow2.f32 %v1160_v13  ;;  %v1135_v43 = vsub.f32 %v3176_v60, %v1117_v34  ;;  %1178 = vadd.xlane.f32.xlu0 %v3217_v62 }
 0x524   : > { %v1134_v31 = vsub.f32 %v3179_v40, %v1115_v24  ;;  %2458 = vpow2.f32 %v1158_v58 }
 0x525   : > { %v3223_v57 = vpop.eup %2448  ;;  %v1164_v2 = vmul.f32 1.442695, %v1135_v43 }
 0x526   : > { %v1162_v63 = vmul.f32 1.442695, %v1134_v31  ;;  %v3225_v45 = vpop.eup %2450  ;;  %1184 = vadd.xlane.f32.xlu1 %v3223_v57  ;;  %v1121_v15 = vpop.xlane.xlu1 %1120 }
 0x527   : > { %v1119_v48 = vpop.xlane.xlu0 %1118  ;;  %2460 = vpow2.f32 %v1164_v2  ;;  %v1137_v11 = vsub.f32 %v3184_v53, %v1121_v15  ;;  %1182 = vadd.xlane.f32.xlu0 %v3225_v45 }
 0x528   : > { %v1136_v60 = vsub.f32 %v3187_v44, %v1119_v48  ;;  %2462 = vpow2.f32 %v1162_v63 }
 0x529   : > { %v3231_v40 = vpop.eup %2452  ;;  %v1168_v1 = vmul.f32 1.442695, %v1137_v11 }
 0x52a   : > { %v1166_v50 = vmul.f32 1.442695, %v1136_v60  ;;  %v3233_v56 = vpop.eup %2454  ;;  %1188 = vadd.xlane.f32.xlu1 %v3231_v40 }
 0x52b   : > { %2464 = vpow2.f32 %v1168_v1  ;;  %1186 = vadd.xlane.f32.xlu0 %v3233_v56 }
 0x52c   : > { %2466 = vpow2.f32 %v1166_v50 }
 0x52d   : > { %v3237_v0 = vpop.eup %2456 }
 0x52e   : > { %v3239_v53 = vpop.eup %2458  ;;  %1192 = vadd.xlane.f32.xlu1 %v3237_v0 }
 0x52f   : > { %1190 = vadd.xlane.f32.xlu0 %v3239_v53 }
 0x531   : > { %v3243_v44 = vpop.eup %2460 }
 0x532   : > { %v3245_v54 = vpop.eup %2462  ;;  %1196 = vadd.xlane.f32.xlu1 %v3243_v44 }
 0x533   : > { %1194 = vadd.xlane.f32.xlu0 %v3245_v54 }
 0x535   : > { %v3249_v22 = vpop.eup %2464 }
 0x536   : > { %v3251_v12 = vpop.eup %2466  ;;  %1200 = vadd.xlane.f32.xlu1 %v3249_v22 }
 0x537   : > { %1198 = vadd.xlane.f32.xlu0 %v3251_v12 }
 0x5a7   : > { %v1173_v17 = vpop.xlane.xlu1 %1172 }
 0x5a8   : > { %2468 = vrcp.f32 %v1173_v17  ;;  %v1171_v13 = vpop.xlane.xlu0 %1170 }
 0x5a9   : > { %2470 = vrcp.f32 %v1171_v13 }
 0x5ab   : > { %v1177_v58 = vpop.xlane.xlu1 %1176 }
 0x5ac   : > { %2472 = vrcp.f32 %v1177_v58  ;;  %v1175_v34 = vpop.xlane.xlu0 %1174 }
 0x5ad   : > { %2474 = vrcp.f32 %v1175_v34 }
 0x5af   : > { %v1181_v24 = vpop.xlane.xlu1 %1180 }
 0x5b0   : > { %2476 = vrcp.f32 %v1181_v24  ;;  %v1179_v43 = vpop.xlane.xlu0 %1178 }
 0x5b1   : > { %2478 = vrcp.f32 %v1179_v43 }
 0x5b2   : > { %v2469_v31 = vpop.eup %2468 }
 0x5b3   : > { %v2471_v2 = vpop.eup %2470  ;;  %v1185_v63 = vpop.xlane.xlu1 %1184  ;;  %v1219_v15 = vmul.f32 %v2469_v31, %v2975_v46 }
 0x5b4   : > { %2480 = vrcp.f32 %v1185_v63  ;;  %v1183_v48 = vpop.xlane.xlu0 %1182  ;;  %v1218_v11 = vmul.f32 %v2471_v2, %v2978_v29 }
 0x5b5   : > { %2482 = vrcp.f32 %v1183_v48  ;;  %v1235_v60 = vmul.f32 %v3199_v55, %v1219_v15 }
 0x5b6   : > { %v2473_v1 = vpop.eup %2472  ;;  %v1234_v50 = vmul.f32 %v3201_v51, %v1218_v11 }
 0x5b7   : > { %v2475_v17 = vpop.eup %2474  ;;  %v1189_v13 = vpop.xlane.xlu1 %1188  ;;  %v1221_v58 = vmul.f32 %v2473_v1, %v2983_v7 }
 0x5b8   : > { %2484 = vrcp.f32 %v1189_v13  ;;  %v1187_v34 = vpop.xlane.xlu0 %1186  ;;  %v1250_v24 = vpack.c.bf16 %v1235_v60, %v1234_v50  ;;  %v1220_v43 = vmul.f32 %v2475_v17, %v2987_v27 }
 0x5b9   : > { %2486 = vrcp.f32 %v1187_v34  ;;  %v1237_v31 = vmul.f32 %v3207_v28, %v1221_v58 }
 0x5ba   : > { %v2477_v63 = vpop.eup %2476  ;;  %2194 = vmatprep.mubr.bf16.mxu0 %v1250_v24  ;;  %v1236_v2 = vmul.f32 %v3209_v52, %v1220_v43 }
 0x5bb   : > { %v2479_v55 = vpop.eup %2478  ;;  %v1193_v15 = vpop.xlane.xlu1 %1192  ;;  %v1223_v51 = vmul.f32 %v2477_v63, %v2995_v25 }
 0x5bc   : > { %2488 = vrcp.f32 %v1193_v15  ;;  %v1191_v48 = vpop.xlane.xlu0 %1190  ;;  %v1251_v11 = vpack.c.bf16 %v1237_v31, %v1236_v2  ;;  %v1222_v1 = vmul.f32 %v2479_v55, %v2998_v23 }
 0x5bd   : > { %2490 = vrcp.f32 %v1191_v48  ;;  %v1239_v60 = vmul.f32 %v3215_v9, %v1223_v51 }
 0x5be   : > { %v2481_v50 = vpop.eup %2480  ;;  %2195 = vmatmul.mubr.bf16.vlgmr.msra.gmra.mrb[4].mxu0 %v1251_v11  ;;  %v1238_v28 = vmul.f32 %v3217_v62, %v1222_v1 }
 0x5bf   : > { %v2483_v17 = vpop.eup %2482  ;;  %v1197_v13 = vpop.xlane.xlu1 %1196  ;;  %v1225_v52 = vmul.f32 %v2481_v50, %v3003_v42 }
 0x5c0   : > { %2492 = vrcp.f32 %v1197_v13  ;;  %v1195_v58 = vpop.xlane.xlu0 %1194  ;;  %v1252_v34 = vpack.c.bf16 %v1239_v60, %v1238_v28  ;;  %v1224_v24 = vmul.f32 %v2483_v17, %v3007_v5 }
 0x5c1   : > { %2494 = vrcp.f32 %v1195_v58  ;;  %v1241_v43 = vmul.f32 %v3223_v57, %v1225_v52 }
 0x5c2   : > { %v2485_v31 = vpop.eup %2484  ;;  %2198 = vmatprep.mubr.bf16.mxu0 %v1252_v34  ;;  %v1240_v9 = vmul.f32 %v3225_v45, %v1224_v24 }
 0x5c3   : > { %v2487_v63 = vpop.eup %2486  ;;  %v1201_v2 = vpop.xlane.xlu1 %1200  ;;  %v1227_v62 = vmul.f32 %v2485_v31, %v3015_v6 }
 0x5c4   : > { %2496 = vrcp.f32 %v1201_v2  ;;  %v1199_v55 = vpop.xlane.xlu0 %1198  ;;  %v1253_v15 = vpack.c.bf16 %v1241_v43, %v1240_v9  ;;  %v1226_v51 = vmul.f32 %v2487_v63, %v3018_v8 }
 0x5c5   : > { %2498 = vrcp.f32 %v1199_v55  ;;  %v1243_v48 = vmul.f32 %v3231_v40, %v1227_v62  ;;  %v3553_v55 = vmov 0.0  }
 0x5c6   : > { %v2489_v11 = vpop.eup %2488  ;;  %2199 = vmatmul.mubr.bf16.gmra.mrb[8].mxu0 %v1253_v15  ;;  %v1242_v57 = vmul.f32 %v3233_v56, %v1226_v51 }
 0x5c7   : > { %v2491_v1 = vpop.eup %2490  ;;  %v1229_v60 = vmul.f32 %v2489_v11, %v3023_v10 }
 0x5c8   : > { %v1254_v45 = vpack.c.bf16 %v1243_v48, %v1242_v57  ;;  %v1228_v50 = vmul.f32 %v2491_v1, %v3027_v35 }
 0x5c9   : > { %v1245_v28 = vmul.f32 %v3237_v0, %v1229_v60 }
 0x5ca   : > { %v2493_v17 = vpop.eup %2492  ;;  %2202 = vmatprep.mubr.bf16.mxu0 %v1254_v45  ;;  %v1244_v13 = vmul.f32 %v3239_v53, %v1228_v50 }
 0x5cb   : > { %v2495_v52 = vpop.eup %2494  ;;  %v1231_v58 = vmul.f32 %v2493_v17, %v3035_v33 }
 0x5cc   : > { %v1255_v40 = vpack.c.bf16 %v1245_v28, %v1244_v13  ;;  %v1230_v34 = vmul.f32 %v2495_v52, %v3038_v36 }
 0x5cd   : > { %v1247_v56 = vmul.f32 %v3243_v44, %v1231_v58  ;;  %v1438_v44 = vsub.s32 5, %v2657_v3  ;;  %v3554_v3 = vmov 0.0|0.0  }
 0x5ce   : > { %v2497_v24 = vpop.eup %2496  ;;  %2203 = vmatmul.mubr.bf16.gmra.mrb[12].mxu0 %v1255_v40  ;;  %v1246_v43 = vmul.f32 %v3245_v54, %v1230_v34 }
 0x5cf   : > { %v2499_v31 = vpop.eup %2498  ;;  %v1233_v9 = vmul.f32 %v2497_v24, %v3043_v47  ;;  %v3291_v54 = vrot.slane %v3060_v41, %v1438_v44 }
 0x5d0   : > { %v1256_v0 = vpack.c.bf16 %v1247_v56, %v1246_v43  ;;  %v1232_v63 = vmul.f32 %v2499_v31, %v3047_v14 }
 0x5d1   : > { %v1249_v53 = vmul.f32 %v3249_v22, %v1233_v9 }
 0x5d2   : > { %2206 = vmatprep.mubr.bf16.mxu0 %v1256_v0  ;;  %v1248_v2 = vmul.f32 %v3251_v12, %v1232_v63 }
 0x5d4   : > { %v1257_v62 = vpack.c.bf16 %v1249_v53, %v1248_v2 }
 0x5d6   : > { %2207 = vmatmul.mubr.bf16.gmra.mrb[16].mxu0 %v1257_v62 }
 0x5d7   : > { %2242 = vmatprep.mubr.msk.f32.mxu0 %vm2594_vm0, %v3553_v55 }
 0x691   : > { %v2196_v15 = vpop.f32.mrb[4].mxu0 }
 0x692   : > { %v1300_v51 = vpop.f32.mrb[5].mxu0  ;;  %v1442_v60 = vmul.f32 %v2196_v15, %v3291_v54 }
 0x693   : > { %v1440_v48 = vmul.f32 %v3291_v54, %v1300_v51  ;;  %v2197_v11 = vpop.f32.mrb[6].mxu0 }
 0x694   : > { %v2329_v57 = vpack.c.bf16 %v2197_v11, %v2196_v15  ;;  %v1303_v22 = vpop.f32.mrb[7].mxu0  ;;  %v1443_v45 = vmul.f32 %v2197_v11, %v3291_v54 }
 0x695   : > { %v2326_v1 = vpack.c.bf16 %v1303_v22, %v1300_v51  ;;  %v1441_v12 = vmul.f32 %v3291_v54, %v1303_v22  ;;  %1456 = vadd.xlane.f32.xlu0 %v1440_v48 }
 0x697   : > { %1458 = vadd.xlane.f32.xlu1 %v1441_v12  ;;  %2327 = vmatpush3.bf16.xpose.msra.mxu0 %v2326_v1 }
 0x698   : > { %2245 = vmatprep.subr.bf16.mxu1 %v2326_v1  ;;  %2328 = vmatprep.subr.bf16.mxu0 %v3554_v3 }
 0x699   : > { %2246 = vmatpush3.bf16.msra.mxu1 %v2326_v1  ;;  %1460 = vadd.xlane.f32.xlu0 %v1442_v60  ;;  %v2200_v50 = vpop.f32.mrb[8].mxu0 }
 0x69a   : > { %2247 = vmatprep.subr.bf16.mxu1 %v2329_v57  ;;  %v1316_v28 = vpop.f32.mrb[9].mxu0  ;;  %v1446_v56 = vmul.f32 %v2200_v50, %v3291_v54 }
 0x69b   : > { %v1444_v17 = vmul.f32 %v3291_v54, %v1316_v28  ;;  %1462 = vadd.xlane.f32.xlu1 %v1443_v45  ;;  %v2201_v13 = vpop.f32.mrb[10].mxu0 }
 0x69c   : > { %v2335_v52 = vpack.c.bf16 %v2201_v13, %v2200_v50  ;;  %v1319_v58 = vpop.f32.mrb[11].mxu0  ;;  %v1447_v24 = vmul.f32 %v2201_v13, %v3291_v54  ;;  %v1364_v50 = vrot.slane %v3060_v41, 4 }
 0x69d   : > { %v2332_v40 = vpack.c.bf16 %v1319_v58, %v1316_v28  ;;  %v1445_v34 = vmul.f32 %v3291_v54, %v1319_v58  ;;  %2248 = vmatpush3.bf16.msra.mxu1 %v2329_v57  ;;  %1464 = vadd.xlane.f32.xlu0 %v1444_v17 }
 0x69f   : > { %2330 = vmatpush3.bf16.xpose.msra.mxu0 %v2329_v57  ;;  %1466 = vadd.xlane.f32.xlu1 %v1445_v34 }
 0x6a0   : > { %2249 = vmatprep.subr.bf16.mxu1 %v2332_v40  ;;  %2331 = vmatprep.subr.bf16.mxu0 %v3554_v3 }
 0x6a1   : > { %2250 = vmatpush3.bf16.msra.mxu1 %v2332_v40  ;;  %1468 = vadd.xlane.f32.xlu0 %v1446_v56  ;;  %v2204_v43 = vpop.f32.mrb[12].mxu0 }
 0x6a2   : > { %2251 = vmatprep.subr.bf16.mxu1 %v2335_v52  ;;  %v1332_v31 = vpop.f32.mrb[13].mxu0  ;;  %v1450_v55 = vmul.f32 %v2204_v43, %v3291_v54 }
 0x6a3   : > { %v1448_v9 = vmul.f32 %v3291_v54, %v1332_v31  ;;  %1470 = vadd.xlane.f32.xlu1 %v1447_v24  ;;  %v2205_v0 = vpop.f32.mrb[14].mxu0 }
 0x6a4   : > { %v2341_v63 = vpack.c.bf16 %v2205_v0, %v2204_v43  ;;  %v1335_v53 = vpop.f32.mrb[15].mxu0  ;;  %v1451_v44 = vmul.f32 %v2205_v0, %v3291_v54 }
 0x6a5   : > { %v2338_v2 = vpack.c.bf16 %v1335_v53, %v1332_v31  ;;  %v1449_v62 = vmul.f32 %v3291_v54, %v1335_v53  ;;  %2252 = vmatpush3.bf16.msra.mxu1 %v2335_v52  ;;  %1472 = vadd.xlane.f32.xlu0 %v1448_v9  ;;  %v3320_v31 = vstv %s1971_s11 }
 0x6a7   : > { %2333 = vmatpush3.bf16.xpose.msra.mxu0 %v2332_v40  ;;  %1474 = vadd.xlane.f32.xlu1 %v1449_v62 }
 0x6a8   : > { %2253 = vmatprep.subr.bf16.mxu1 %v2338_v2  ;;  %2334 = vmatprep.subr.bf16.mxu0 %v3554_v3 }
 0x6a9   : > { %2254 = vmatpush3.bf16.msra.mxu1 %v2338_v2  ;;  %1476 = vadd.xlane.f32.xlu0 %v1450_v55  ;;  %v2208_v15 = vpop.f32.mrb[16].mxu0 }
 0x6aa   : > { %2255 = vmatprep.subr.bf16.mxu1 %v2341_v63  ;;  %v1348_v51 = vpop.f32.mrb[17].mxu0  ;;  %v1454_v60 = vmul.f32 %v2208_v15, %v3291_v54 }
 0x6ab   : > { %v1452_v48 = vmul.f32 %v3291_v54, %v1348_v51  ;;  %1478 = vadd.xlane.f32.xlu1 %v1451_v44  ;;  %v2209_v11 = vpop.f32.mrb[18].mxu0 }
 0x6ac   : > { %v2347_v57 = vpack.c.bf16 %v2209_v11, %v2208_v15  ;;  %v1351_v22 = vpop.f32.mrb[19].mxu0  ;;  %v1455_v45 = vmul.f32 %v2209_v11, %v3291_v54 }
 0x6ad   : > { %v2344_v1 = vpack.c.bf16 %v1351_v22, %v1348_v51  ;;  %v1453_v12 = vmul.f32 %v3291_v54, %v1351_v22  ;;  %2256 = vmatpush3.bf16.msra.mxu1 %v2341_v63  ;;  %1480 = vadd.xlane.f32.xlu0 %v1452_v48 }
 0x6af   : > { %2336 = vmatpush3.bf16.xpose.msra.mxu0 %v2335_v52  ;;  %1482 = vadd.xlane.f32.xlu1 %v1453_v12 }
 0x6b0   : > { %2257 = vmatprep.subr.bf16.mxu1 %v2344_v1  ;;  %2337 = vmatprep.subr.bf16.mxu0 %v3554_v3 }
 0x6b1   : > { %2258 = vmatpush3.bf16.msra.mxu1 %v2344_v1  ;;  %1484 = vadd.xlane.f32.xlu0 %v1454_v60 }
 0x6b2   : > { %2259 = vmatprep.subr.bf16.mxu1 %v2347_v57 }
 0x6b3   : > { %1486 = vadd.xlane.f32.xlu1 %v1455_v45 }
 0x6b5   : > { %2260 = vmatpush3.bf16.msra.mxu1 %v2347_v57 }
 0x6b7   : > { %2339 = vmatpush3.bf16.xpose.msra.mxu0 %v2338_v2 }
 0x6b8   : > { %2340 = vmatprep.subr.bf16.mxu0 %v3554_v3 }
 0x6bf   : > { %2342 = vmatpush3.bf16.xpose.msra.mxu0 %v2341_v63 }
 0x6c0   : > { %2343 = vmatprep.subr.bf16.mxu0 %v3554_v3 }
 0x6c7   : > { %2345 = vmatpush3.bf16.xpose.msra.mxu0 %v2344_v1 }
 0x6c8   : > { %2346 = vmatprep.subr.bf16.mxu0 %v3554_v3 }
 0x6cf   : > { %2348 = vmatpush3.bf16.xpose.msra.mxu0 %v2347_v57 }
 0x6d6   : > { %2243 = vmatmul.mubr.f32.vlgmr.msra.gmra.mrb[2].mxu0 %v1364_v50 }
 0x722   : > { %v1457_v54 = vpop.xlane.xlu0 %1456 }
 0x724   : > { %v1459_v28 = vpop.xlane.xlu1 %1458 }
 0x726   : > { %v1461_v13 = vpop.xlane.xlu0 %1460 }
 0x728   : > { %v1463_v17 = vpop.xlane.xlu1 %1462 }
 0x72a   : > { %v1465_v58 = vpop.xlane.xlu0 %1464 }
 0x72c   : > { %v1467_v52 = vpop.xlane.xlu1 %1466 }
 0x72e   : > { %v1469_v34 = vpop.xlane.xlu0 %1468 }
 0x730   : > { %v1471_v40 = vpop.xlane.xlu1 %1470 }
 0x732   : > { %v1473_v53 = vpop.xlane.xlu0 %1472 }
 0x734   : > { %v1475_v3 = vpop.xlane.xlu1 %1474 }
 0x738   : > { %v1479_v45 = vpop.xlane.xlu1 %1478 }
 0x7a9   : > { %v1432_v56 = vpop.f32.mrb[2].mxu0 }
 0x7aa   : > { %v3318_v24 = vrot.slane %v1432_v56, %v2726_v4  ;;  %v2244_v43 = vpop.f32.mrb[3].mxu0 }
 0x7ac   : > { %v1493_v41 = vadd.f32 %v3318_v24, %v1459_v28  ;;  %v1492_v9 = vadd.f32 %v3318_v24, %v1457_v54  ;;  %v1495_v0 = vadd.f32 %v3318_v24, %v1463_v17  ;;  %v1494_v63 = vadd.f32 %v3318_v24, %v1461_v13  ;;  %v1477_v13 = vpop.xlane.xlu0 %1476 }
 0x7ad   : > { %v1497_v2 = vadd.f32 %v3318_v24, %v1467_v52  ;;  %v1496_v62 = vadd.f32 %v3318_v24, %v1465_v58  ;;  %v1499_v4 = vadd.f32 %v3318_v24, %v1471_v40  ;;  %v1498_v55 = vadd.f32 %v3318_v24, %v1469_v34 }
 0x7ae   : > { %v1510_v44 = vadd.f32 %v3320_v31, %v1493_v41  ;;  %v1509_v15 = vadd.f32 %v3320_v31, %v1492_v9  ;;  %v1512_v51 = vadd.f32 %v3320_v31, %v1495_v0  ;;  %v1511_v48 = vadd.f32 %v3320_v31, %v1494_v63 }
 0x7af   : > { %v1514_v11 = vadd.f32 %v3320_v31, %v1497_v2  ;;  %v1513_v57 = vadd.f32 %v3320_v31, %v1496_v62  ;;  %v1516_v54 = vadd.f32 %v3320_v31, %v1499_v4  ;;  %v1515_v17 = vadd.f32 %v3320_v31, %v1498_v55  ;;  %v1483_v4 = vpop.xlane.xlu1 %1482 }
 0x7b0   : > { %v1526_v22 = vmul.f32 0.2, %v1510_v44  ;;  %v1525_v1 = vmul.f32 0.2, %v1509_v15  ;;  %v1528_v12 = vmul.f32 0.2, %v1512_v51  ;;  %v1501_v40 = vadd.f32 %v3318_v24, %v1475_v3 }
 0x7b1   : > { %v1527_v60 = vmul.f32 0.2, %v1511_v48  ;;  %v1530_v52 = vmul.f32 0.2, %v1514_v11  ;;  %v1529_v58 = vmul.f32 0.2, %v1513_v57  ;;  %v1500_v34 = vadd.f32 %v3318_v24, %v1473_v53 }
 0x7b2   : > { %v1542_v50 = vmax.f32 %v1510_v44, %v1526_v22  ;;  %v1541_v28 = vmax.f32 %v1509_v15, %v1525_v1  ;;  %v1544_v41 = vmax.f32 %v1512_v51, %v1528_v12  ;;  %v1532_v0 = vmul.f32 0.2, %v1516_v54  ;;  %v1481_v15 = vpop.xlane.xlu0 %1480 }
 0x7b3   : > { %v1543_v9 = vmax.f32 %v1511_v48, %v1527_v60  ;;  %v1531_v63 = vmul.f32 0.2, %v1515_v17  ;;  %v1546_v2 = vmax.f32 %v1514_v11, %v1530_v52  ;;  %v1545_v62 = vmax.f32 %v1513_v57, %v1529_v58 }
 0x7b4   : > { %v3341_v56 = vadd.f32 %v1542_v50, %v2736_v18  ;;  %v3344_v43 = vadd.f32 %v1541_v28, %v2739_v19  ;;  %v1518_v3 = vadd.f32 %v3320_v31, %v1501_v40  ;;  %v1517_v53 = vadd.f32 %v3320_v31, %v1500_v34  ;;  %v1487_v50 = vpop.xlane.xlu1 %1486 }
 0x7b5   : > { %v3351_v18 = vadd.f32 %v1544_v41, %v2742_v20  ;;  %v3354_v19 = vadd.f32 %v1543_v9, %v2764_v49  ;;  %v1503_v55 = vadd.f32 %v3318_v24, %v1479_v45  ;;  %v1502_v44 = vadd.f32 %v3318_v24, %v1477_v13  ;;  %v3555_v49 = vld [vmem:[#allocation5_spill] sm:$0xff] }
 0x7b6   : > { %1575 = vmax.xlane.f32.xlu1 %v3341_v56  ;;  %1573 = vmax.xlane.f32.xlu0 %v3344_v43  ;;  %v1548_v51 = vmax.f32 %v1516_v54, %v1532_v0  ;;  %v1547_v48 = vmax.f32 %v1515_v17, %v1531_v63  ;;  %v3361_v11 = vadd.f32 %v1546_v2, %v2777_v59  ;;  %v1534_v57 = vmul.f32 0.2, %v1518_v3  ;;  %v1485_v54 = vpop.xlane.xlu0 %1484 }
 0x7b7   : > { %v1533_v20 = vmul.f32 0.2, %v1517_v53  ;;  %v1505_v22 = vadd.f32 %v3318_v24, %v1483_v4  ;;  %v3365_v1 = vadd.f32 %v1545_v62, %v3555_v49  ;;  %v1520_v12 = vadd.f32 %v3320_v31, %v1503_v55 }
 0x7b8   : > { %v1519_v60 = vadd.f32 %v3320_v31, %v1502_v44  ;;  %v1504_v45 = vadd.f32 %v3318_v24, %v1481_v15  ;;  %v3373_v59 = vadd.f32 %v1548_v51, %v2785_v61  ;;  %v3376_v28 = vadd.f32 %v1547_v48, %v2814_v26  ;;  %v3556_v26 = vld [vmem:[#allocation6_spill] sm:$0xff] }
 0x7b9   : > { %v1550_v17 = vmax.f32 %v1518_v3, %v1534_v57  ;;  %v1549_v13 = vmax.f32 %v1517_v53, %v1533_v20  ;;  %v1522_v52 = vadd.f32 %v3320_v31, %v1505_v22  ;;  %v1507_v58 = vadd.f32 %v3318_v24, %v1487_v50 }
 0x7ba   : > { %1579 = vmax.xlane.f32.xlu1 %v3351_v18  ;;  %1577 = vmax.xlane.f32.xlu0 %v3354_v19  ;;  %v1536_v40 = vmul.f32 0.2, %v1520_v12  ;;  %v1535_v34 = vmul.f32 0.2, %v1519_v60  ;;  %v1521_v41 = vadd.f32 %v3320_v31, %v1504_v45  ;;  %v1506_v9 = vadd.f32 %v3318_v24, %v1485_v54 }
 0x7bb   : > { %v3385_v61 = vadd.f32 %v1550_v17, %v2822_v38  ;;  %v3388_v0 = vadd.f32 %v1549_v13, %v3556_v26  ;;  %v1538_v63 = vmul.f32 0.2, %v1522_v52  ;;  %v1524_v2 = vadd.f32 %v3320_v31, %v1507_v58 }
 0x7bc   : > { %v1552_v62 = vmax.f32 %v1520_v12, %v1536_v40  ;;  %v1551_v3 = vmax.f32 %v1519_v60, %v1535_v34  ;;  %v1537_v53 = vmul.f32 0.2, %v1521_v41  ;;  %v1523_v4 = vadd.f32 %v3320_v31, %v1506_v9 }
 0x7bd   : > { %v1554_v24 = vmax.f32 %v1522_v52, %v1538_v63  ;;  %v1540_v55 = vmul.f32 0.2, %v1524_v2 }
 0x7be   : > { %1583 = vmax.xlane.f32.xlu1 %v3361_v11  ;;  %1581 = vmax.xlane.f32.xlu0 %v3365_v1  ;;  %v3395_v38 = vadd.f32 %v1552_v62, %v2851_v16  ;;  %v3398_v44 = vadd.f32 %v1551_v3, %v2854_v21  ;;  %v1553_v15 = vmax.f32 %v1521_v41, %v1537_v53  ;;  %v1539_v51 = vmul.f32 0.2, %v1523_v4 }
 0x7bf   : > { %v3403_v31 = vadd.f32 %v1554_v24, %v2865_v30  ;;  %v1556_v57 = vmax.f32 %v1524_v2, %v1540_v55 }
 0x7c0   : > { %v3406_v48 = vadd.f32 %v1553_v15, %v2868_v32  ;;  %v1555_v20 = vmax.f32 %v1523_v4, %v1539_v51 }
 0x7c1   : > { %v3411_v16 = vadd.f32 %v1556_v57, %v2879_v37 }
 0x7c2   : > { %1587 = vmax.xlane.f32.xlu1 %v3373_v59  ;;  %1585 = vmax.xlane.f32.xlu0 %v3376_v28  ;;  %v3414_v21 = vadd.f32 %v1555_v20, %v2882_v39 }
 0x7c6   : > { %1591 = vmax.xlane.f32.xlu1 %v3385_v61  ;;  %1589 = vmax.xlane.f32.xlu0 %v3388_v0 }
 0x7ca   : > { %1595 = vmax.xlane.f32.xlu1 %v3395_v38  ;;  %1593 = vmax.xlane.f32.xlu0 %v3398_v44 }
 0x7ce   : > { %1599 = vmax.xlane.f32.xlu1 %v3403_v31  ;;  %1597 = vmax.xlane.f32.xlu0 %v3406_v48 }
 0x7d2   : > { %1603 = vmax.xlane.f32.xlu1 %v3411_v16  ;;  %1601 = vmax.xlane.f32.xlu0 %v3414_v21 }
 0x843   : > { %v1576_v30 = vpop.xlane.xlu1 %1575  ;;  %v1574_v22 = vpop.xlane.xlu0 %1573 }
 0x844   : > { %v1606_v32 = vsub.f32 %v3341_v56, %v1576_v30  ;;  %v1605_v49 = vsub.f32 %v3344_v43, %v1574_v22 }
 0x846   : > { %v1623_v12 = vmul.f32 1.442695, %v1606_v32  ;;  %v1621_v60 = vmul.f32 1.442695, %v1605_v49 }
 0x847   : > { %v1580_v45 = vpop.xlane.xlu1 %1579  ;;  %v1578_v50 = vpop.xlane.xlu0 %1577 }
 0x848   : > { %2500 = vpow2.f32 %v1623_v12  ;;  %v1608_v37 = vsub.f32 %v3351_v18, %v1580_v45  ;;  %v1607_v39 = vsub.f32 %v3354_v19, %v1578_v50 }
 0x849   : > { %2502 = vpow2.f32 %v1621_v60 }
 0x84a   : > { %v1627_v54 = vmul.f32 1.442695, %v1608_v37  ;;  %v1625_v17 = vmul.f32 1.442695, %v1607_v39 }
 0x84b   : > { %v1584_v13 = vpop.xlane.xlu1 %1583  ;;  %v1582_v52 = vpop.xlane.xlu0 %1581 }
 0x84c   : > { %2504 = vpow2.f32 %v1627_v54  ;;  %v1610_v58 = vsub.f32 %v3361_v11, %v1584_v13  ;;  %v1609_v56 = vsub.f32 %v3365_v1, %v1582_v52 }
 0x84d   : > { %2506 = vpow2.f32 %v1625_v17 }
 0x84e   : > { %v1631_v43 = vmul.f32 1.442695, %v1610_v58  ;;  %v1629_v40 = vmul.f32 1.442695, %v1609_v56 }
 0x84f   : > { %v1588_v34 = vpop.xlane.xlu1 %1587  ;;  %v1586_v41 = vpop.xlane.xlu0 %1585 }
 0x850   : > { %2508 = vpow2.f32 %v1631_v43  ;;  %v1612_v18 = vsub.f32 %v3373_v59, %v1588_v34  ;;  %v1611_v19 = vsub.f32 %v3376_v28, %v1586_v41 }
 0x851   : > { %2510 = vpow2.f32 %v1629_v40 }
 0x852   : > { %v3426_v9 = vpop.eup %2500  ;;  %v1635_v26 = vmul.f32 1.442695, %v1612_v18  ;;  %v1633_v63 = vmul.f32 1.442695, %v1611_v19 }
 0x853   : > { %v3428_v2 = vpop.eup %2502  ;;  %1655 = vadd.xlane.f32.xlu1 %v3426_v9  ;;  %v1592_v11 = vpop.xlane.xlu1 %1591 }
 0x854   : > { %v1590_v1 = vpop.xlane.xlu0 %1589  ;;  %2512 = vpow2.f32 %v1635_v26  ;;  %v1614_v62 = vsub.f32 %v3385_v61, %v1592_v11  ;;  %1653 = vadd.xlane.f32.xlu0 %v3428_v2 }
 0x855   : > { %v1613_v59 = vsub.f32 %v3388_v0, %v1590_v1  ;;  %2514 = vpow2.f32 %v1633_v63 }
 0x856   : > { %v3434_v28 = vpop.eup %2504  ;;  %v1639_v3 = vmul.f32 1.442695, %v1614_v62 }
 0x857   : > { %v1637_v53 = vmul.f32 1.442695, %v1613_v59  ;;  %v3436_v4 = vpop.eup %2506  ;;  %1659 = vadd.xlane.f32.xlu1 %v3434_v28  ;;  %v1596_v24 = vpop.xlane.xlu1 %1595 }
 0x858   : > { %v1594_v55 = vpop.xlane.xlu0 %1593  ;;  %2516 = vpow2.f32 %v1639_v3  ;;  %v1616_v15 = vsub.f32 %v3395_v38, %v1596_v24  ;;  %1657 = vadd.xlane.f32.xlu0 %v3436_v4 }
 0x859   : > { %v1615_v61 = vsub.f32 %v3398_v44, %v1594_v55  ;;  %2518 = vpow2.f32 %v1637_v53 }
 0x85a   : > { %v3442_v0 = vpop.eup %2508  ;;  %v1643_v51 = vmul.f32 1.442695, %v1616_v15 }
 0x85b   : > { %v1641_v57 = vmul.f32 1.442695, %v1615_v61  ;;  %v3444_v20 = vpop.eup %2510  ;;  %1663 = vadd.xlane.f32.xlu1 %v3442_v0  ;;  %v1600_v30 = vpop.xlane.xlu1 %1599 }
 0x85c   : > { %v1598_v22 = vpop.xlane.xlu0 %1597  ;;  %2520 = vpow2.f32 %v1643_v51  ;;  %v1618_v32 = vsub.f32 %v3403_v31, %v1600_v30  ;;  %1661 = vadd.xlane.f32.xlu0 %v3444_v20 }
 0x85d   : > { %v1617_v38 = vsub.f32 %v3406_v48, %v1598_v22  ;;  %2522 = vpow2.f32 %v1641_v57 }
 0x85e   : > { %v3450_v44 = vpop.eup %2512  ;;  %v1647_v49 = vmul.f32 1.442695, %v1618_v32 }
 0x85f   : > { %v1645_v12 = vmul.f32 1.442695, %v1617_v38  ;;  %v3452_v60 = vpop.eup %2514  ;;  %1667 = vadd.xlane.f32.xlu1 %v3450_v44  ;;  %v1604_v45 = vpop.xlane.xlu1 %1603 }
 0x860   : > { %v1602_v50 = vpop.xlane.xlu0 %1601  ;;  %2524 = vpow2.f32 %v1647_v49  ;;  %v1620_v37 = vsub.f32 %v3411_v16, %v1604_v45  ;;  %1665 = vadd.xlane.f32.xlu0 %v3452_v60 }
 0x861   : > { %v1619_v31 = vsub.f32 %v3414_v21, %v1602_v50  ;;  %2526 = vpow2.f32 %v1645_v12 }
 0x862   : > { %v3458_v48 = vpop.eup %2516  ;;  %v1651_v39 = vmul.f32 1.442695, %v1620_v37 }
 0x863   : > { %v1649_v54 = vmul.f32 1.442695, %v1619_v31  ;;  %v3460_v17 = vpop.eup %2518  ;;  %1671 = vadd.xlane.f32.xlu1 %v3458_v48 }
 0x864   : > { %2528 = vpow2.f32 %v1651_v39  ;;  %1669 = vadd.xlane.f32.xlu0 %v3460_v17 }
 0x865   : > { %2530 = vpow2.f32 %v1649_v54 }
 0x866   : > { %v3464_v13 = vpop.eup %2520 }
 0x867   : > { %v3466_v16 = vpop.eup %2522  ;;  %1675 = vadd.xlane.f32.xlu1 %v3464_v13 }
 0x868   : > { %1673 = vadd.xlane.f32.xlu0 %v3466_v16 }
 0x86a   : > { %v3470_v21 = vpop.eup %2524 }
 0x86b   : > { %v3472_v52 = vpop.eup %2526  ;;  %1679 = vadd.xlane.f32.xlu1 %v3470_v21 }
 0x86c   : > { %1677 = vadd.xlane.f32.xlu0 %v3472_v52 }
 0x86e   : > { %v3476_v58 = vpop.eup %2528 }
 0x86f   : > { %v3478_v56 = vpop.eup %2530  ;;  %1683 = vadd.xlane.f32.xlu1 %v3476_v58 }
 0x870   : > { %1681 = vadd.xlane.f32.xlu0 %v3478_v56 }
 0x8e0   : > { %v1656_v43 = vpop.xlane.xlu1 %1655 }
 0x8e1   : > { %2532 = vrcp.f32 %v1656_v43  ;;  %v1654_v40 = vpop.xlane.xlu0 %1653 }
 0x8e2   : > { %2534 = vrcp.f32 %v1654_v40 }
 0x8e4   : > { %v1660_v34 = vpop.xlane.xlu1 %1659 }
 0x8e5   : > { %2536 = vrcp.f32 %v1660_v34  ;;  %v1658_v41 = vpop.xlane.xlu0 %1657 }
 0x8e6   : > { %2538 = vrcp.f32 %v1658_v41 }
 0x8e8   : > { %v1664_v18 = vpop.xlane.xlu1 %1663 }
 0x8e9   : > { %2540 = vrcp.f32 %v1664_v18  ;;  %v1662_v19 = vpop.xlane.xlu0 %1661 }
 0x8ea   : > { %2542 = vrcp.f32 %v1662_v19 }
 0x8eb   : > { %v2533_v26 = vpop.eup %2532 }
 0x8ec   : > { %v2535_v63 = vpop.eup %2534  ;;  %v1668_v11 = vpop.xlane.xlu1 %1667  ;;  %v1702_v1 = vmul.f32 %v2533_v26, %v2975_v46 }
 0x8ed   : > { %2544 = vrcp.f32 %v1668_v11  ;;  %v1666_v62 = vpop.xlane.xlu0 %1665  ;;  %v1701_v59 = vmul.f32 %v2535_v63, %v2978_v29 }
 0x8ee   : > { %2546 = vrcp.f32 %v1666_v62  ;;  %v1718_v3 = vmul.f32 %v3426_v9, %v1702_v1 }
 0x8ef   : > { %v2537_v53 = vpop.eup %2536  ;;  %v1717_v24 = vmul.f32 %v3428_v2, %v1701_v59 }
 0x8f0   : > { %v2539_v55 = vpop.eup %2538  ;;  %v1672_v15 = vpop.xlane.xlu1 %1671  ;;  %v1704_v61 = vmul.f32 %v2537_v53, %v2983_v7 }
 0x8f1   : > { %2548 = vrcp.f32 %v1672_v15  ;;  %v1670_v51 = vpop.xlane.xlu0 %1669  ;;  %v1733_v57 = vpack.c.bf16 %v1718_v3, %v1717_v24  ;;  %v1703_v30 = vmul.f32 %v2539_v55, %v2987_v27 }
 0x8f2   : > { %2550 = vrcp.f32 %v1670_v51  ;;  %v1720_v46 = vmul.f32 %v3434_v28, %v1704_v61 }
 0x8f3   : > { %v2541_v22 = vpop.eup %2540  ;;  %2261 = vmatprep.mubr.bf16.mxu1 %v1733_v57  ;;  %v1719_v29 = vmul.f32 %v3436_v4, %v1703_v30 }
 0x8f4   : > { %v2543_v9 = vpop.eup %2542  ;;  %v1676_v32 = vpop.xlane.xlu1 %1675  ;;  %v1706_v2 = vmul.f32 %v2541_v22, %v2995_v25 }
 0x8f5   : > { %2552 = vrcp.f32 %v1676_v32  ;;  %v1674_v38 = vpop.xlane.xlu0 %1673  ;;  %v1734_v49 = vpack.c.bf16 %v1720_v46, %v1719_v29  ;;  %v1705_v7 = vmul.f32 %v2543_v9, %v2998_v23 }
 0x8f6   : > { %2554 = vrcp.f32 %v1674_v38  ;;  %v1722_v12 = vmul.f32 %v3442_v0, %v1706_v2 }
 0x8f7   : > { %v2545_v27 = vpop.eup %2544  ;;  %2262 = vmatmul.mubr.bf16.vlgmr.msra.gmra.mrb[20].mxu1 %v1734_v49  ;;  %v1721_v28 = vmul.f32 %v3444_v20, %v1705_v7 }
 0x8f8   : > { %v2547_v45 = vpop.eup %2546  ;;  %v1680_v50 = vpop.xlane.xlu1 %1679  ;;  %v1708_v4 = vmul.f32 %v2545_v27, %v3003_v42 }
 0x8f9   : > { %2556 = vrcp.f32 %v1680_v50  ;;  %v1678_v37 = vpop.xlane.xlu0 %1677  ;;  %v1735_v31 = vpack.c.bf16 %v1722_v12, %v1721_v28  ;;  %v1707_v25 = vmul.f32 %v2547_v45, %v3007_v5 }
 0x8fa   : > { %2558 = vrcp.f32 %v1678_v37  ;;  %v1724_v39 = vmul.f32 %v3450_v44, %v1708_v4 }
 0x8fb   : > { %v2549_v23 = vpop.eup %2548  ;;  %2265 = vmatprep.mubr.bf16.mxu1 %v1735_v31  ;;  %v1723_v0 = vmul.f32 %v3452_v60, %v1707_v25 }
 0x8fc   : > { %v2551_v54 = vpop.eup %2550  ;;  %v1684_v43 = vpop.xlane.xlu1 %1683  ;;  %v1710_v20 = vmul.f32 %v2549_v23, %v3015_v6 }
 0x8fd   : > { %2560 = vrcp.f32 %v1684_v43  ;;  %v1682_v40 = vpop.xlane.xlu0 %1681  ;;  %v1736_v34 = vpack.c.bf16 %v1724_v39, %v1723_v0  ;;  %v1709_v42 = vmul.f32 %v2551_v54, %v3018_v8 }
 0x8fe   : > { %2562 = vrcp.f32 %v1682_v40  ;;  %v1726_v41 = vmul.f32 %v3458_v48, %v1710_v20 }
 0x8ff   : > { %v2553_v5 = vpop.eup %2552  ;;  %2266 = vmatmul.mubr.bf16.gmra.mrb[24].mxu1 %v1736_v34  ;;  %v1725_v44 = vmul.f32 %v3460_v17, %v1709_v42 }
 0x900   : > { %v2555_v18 = vpop.eup %2554  ;;  %v1712_v19 = vmul.f32 %v2553_v5, %v3023_v10 }
 0x901   : > { %v1737_v60 = vpack.c.bf16 %v1726_v41, %v1725_v44  ;;  %v1711_v26 = vmul.f32 %v2555_v18, %v3027_v35 }
 0x902   : > { %v1728_v6 = vmul.f32 %v3464_v13, %v1712_v19 }
 0x903   : > { %v2557_v63 = vpop.eup %2556  ;;  %2269 = vmatprep.mubr.bf16.mxu1 %v1737_v60  ;;  %v1727_v11 = vmul.f32 %v3466_v16, %v1711_v26 }
 0x904   : > { %v2559_v8 = vpop.eup %2558  ;;  %v1714_v1 = vmul.f32 %v2557_v63, %v3035_v33 }
 0x905   : > { %v1738_v48 = vpack.c.bf16 %v1728_v6, %v1727_v11  ;;  %v1713_v62 = vmul.f32 %v2559_v8, %v3038_v36 }
 0x906   : > { %v1730_v17 = vmul.f32 %v3470_v21, %v1714_v1 }
 0x907   : > { %v2561_v59 = vpop.eup %2560  ;;  %2270 = vmatmul.mubr.bf16.gmra.mrb[28].mxu1 %v1738_v48  ;;  %v1729_v10 = vmul.f32 %v3472_v52, %v1713_v62 }
 0x908   : > { %v2563_v35 = vpop.eup %2562  ;;  %v1716_v13 = vmul.f32 %v2561_v59, %v3043_v47 }
 0x909   : > { %v1739_v3 = vpack.c.bf16 %v1730_v17, %v1729_v10  ;;  %v1715_v53 = vmul.f32 %v2563_v35, %v3047_v14 }
 0x90a   : > { %v1732_v16 = vmul.f32 %v3476_v58, %v1716_v13 }
 0x90b   : > { %2273 = vmatprep.mubr.bf16.mxu1 %v1739_v3  ;;  %v1731_v33 = vmul.f32 %v3478_v56, %v1715_v53 }
 0x90d   : > { %v1740_v24 = vpack.c.bf16 %v1732_v16, %v1731_v33 }
 0x90f   : > { %2274 = vmatmul.mubr.bf16.gmra.mrb[32].mxu1 %v1740_v24 }
 0x9ca   : > { %v2263_v36 = vpop.f32.mrb[20].mxu1 }
 0x9cb   : > { %1848 = vst [vmem:[%s3519_s14 + $0x10] sm:$0xff] %v2263_v36  ;;  %v1783_v47 = vpop.f32.mrb[21].mxu1 }
 0x9cc   : > { %1846 = vst [vmem:[%s3519_s14] sm:$0xff] %v1783_v47  ;;  %v2264_v14 = vpop.f32.mrb[22].mxu1 }
 0x9cd   : > { %1849 = vst [vmem:[%s3519_s14 + $0x18] sm:$0xff] %v2264_v14  ;;  %v1786_v21 = vpop.f32.mrb[23].mxu1 }
 0x9ce   : > { %1847 = vst [vmem:[%s3519_s14 + $0x8] sm:$0xff] %v1786_v21 }
 0x9d2   : > { %v2267_v52 = vpop.f32.mrb[24].mxu1 }
 0x9d3   : > { %1852 = vst [vmem:[%s3519_s14 + $0x30] sm:$0xff] %v2267_v52  ;;  %v1799_v58 = vpop.f32.mrb[25].mxu1 }
 0x9d4   : > { %1850 = vst [vmem:[%s3519_s14 + $0x20] sm:$0xff] %v1799_v58  ;;  %v2268_v56 = vpop.f32.mrb[26].mxu1 }
 0x9d5   : > { %1853 = vst [vmem:[%s3519_s14 + $0x38] sm:$0xff] %v2268_v56  ;;  %v1802_v55 = vpop.f32.mrb[27].mxu1 }
 0x9d6   : > { %1851 = vst [vmem:[%s3519_s14 + $0x28] sm:$0xff] %v1802_v55 }
 0x9da   : > { %v2271_v15 = vpop.f32.mrb[28].mxu1 }
 0x9db   : > { %1856 = vst [vmem:[%s3519_s14 + $0x50] sm:$0xff] %v2271_v15  ;;  %v1815_v61 = vpop.f32.mrb[29].mxu1 }
 0x9dc   : > { %1854 = vst [vmem:[%s3519_s14 + $0x40] sm:$0xff] %v1815_v61  ;;  %v2272_v51 = vpop.f32.mrb[30].mxu1 }
 0x9dd   : > { %1857 = vst [vmem:[%s3519_s14 + $0x58] sm:$0xff] %v2272_v51  ;;  %v1818_v57 = vpop.f32.mrb[31].mxu1 }
 0x9de   : > { %1855 = vst [vmem:[%s3519_s14 + $0x48] sm:$0xff] %v1818_v57 }
 0x9e2   : > { %v2275_v30 = vpop.f32.mrb[32].mxu1 }
 0x9e3   : > { %1860 = vst [vmem:[%s3519_s14 + $0x70] sm:$0xff] %v2275_v30  ;;  %v1831_v46 = vpop.f32.mrb[33].mxu1 }
 0x9e4   : > { %1858 = vst [vmem:[%s3519_s14 + $0x60] sm:$0xff] %v1831_v46  ;;  %v2276_v22 = vpop.f32.mrb[34].mxu1 }
 0x9e5   : > { %1861 = vst [vmem:[%s3519_s14 + $0x78] sm:$0xff] %v2276_v22  ;;  %v1834_v29 = vpop.f32.mrb[35].mxu1 }
 0x9e6   : > { %1859 = vst [vmem:[%s3519_s14 + $0x68] sm:$0xff] %v1834_v29 }
 0x9e7 PF: > { %s15_s15 = sadd.s32 1, %s2590_s15  }
 0x9e8   : > { %p12_p1 = scmp.ge.s32.totalorder %s15_s15, 4  }
 0x9ea   :  { %14 = sbr.rel (!%p12_p1) target bundleno = 1 (0x1), region = 74 }
 0x9f1   :  { %1883 = vsyncpa [#allocation3], 1 }
 0x9f2   :  { %1885 = vsyncpa [#allocation3 + $0x1], 1 }

</bundles_post_ra>
